<compile_context>
chip_gen: v6e
topology: v6e:2x2x1
jax: 0.10.0
libtpu: 0.0.40
codegen_flags: <defaults>
</compile_context>

<pallas_src>
import functools

import jax
import jax.numpy as jnp
from jax import lax
from jax.experimental import pallas as pl
from jax.experimental.pallas import tpu as pltpu

BN_EPS = 1e-5
LANES = 128


# ---------------------------------------------------------------------------
# Small trace-time helpers
# ---------------------------------------------------------------------------
def _round_up(x, m):
    return (x + m - 1) // m * m


def _largest_divisor_leq(n, cap):
    cap = max(1, min(cap, n))
    for d in range(cap, 0, -1):
        if n % d == 0:
            return d
    return n


def _choose_row_block(h, w, hint=None):
    """Rows per H-block (must divide H); ~1024 GEMM rows per grid step."""
    if hint is not None and h % hint == 0:
        return hint
    target = max(1, 1024 // max(w, 1))
    return _largest_divisor_leq(h, target)


def _choose_channel_tile(cp):
    # 256-wide output-channel tiles fill the v6e/v7x 256x256 MXU; 128 otherwise
    # (also the v5e MXU width).
    return 256 if cp % 256 == 0 else 128


def _pick_flat_tile(m, cap=2048):
    """Row tile for the memory-bound BN+ReLU pass (multiple of 8 or full M)."""
    if m <= cap:
        return m
    for d in range(cap - cap % 8, 7, -8):
        if m % d == 0:
            return d
    return m  # fallback: one full block (always layout-legal)


def _default_vmem_limit():
    # Generation-aware scoped-VMEM limit: ~96 MiB on v5e/v6e (128 MiB phys),
    # ~48 MiB on v7x (64 MiB phys); conservative 32 MiB if the query fails.
    try:
        cap = int(pltpu.get_tpu_info().vmem_capacity_bytes)
        return min(cap * 3 // 4, 96 * 1024 * 1024)
    except Exception:
        return 32 * 1024 * 1024


# ---------------------------------------------------------------------------
# Pass 1: 3x3 conv as 9 shifted matmuls (taps formed in-kernel from a halo'd
# row window) + per-tile partial BatchNorm statistics.
# ---------------------------------------------------------------------------
def _make_conv_pass1_kernel(*, th, h_out, w_out, fuse_affine, compute_dtype):
    def body(xm_ref, xa_ref, xb_ref, w_ref, aff_ref, y_ref, st_ref):
        i = pl.program_id(1)                            # H row-block index
        xm = xm_ref[0]                                  # (th,   W+2, Cin)
        xa = xa_ref[0]                                  # (1,    W+2, Cin)
        xb = xb_ref[0]                                  # (1,    W+2, Cin)
        xw = jnp.concatenate([xm, xa, xb], axis=0)      # (th+2, W+2, Cin)
        cin = xw.shape[-1]

        if fuse_affine:
            # Previous stage's BN affine + ReLU applied while the tile is
            # VMEM-resident; the spatial padding border is re-zeroed so it
            # matches zero padding in post-BN/ReLU space.
            scale = aff_ref[0:1, :].reshape(1, 1, cin)
            shift = aff_ref[1:2, :].reshape(1, 1, cin)
            act = jnp.maximum(xw.astype(jnp.float32) * scale + shift, 0.0)
            hp = i * th + lax.broadcasted_iota(
                jnp.int32, (th + 2, w_out + 2, 1), 0)
            wp = lax.broadcasted_iota(jnp.int32, (th + 2, w_out + 2, 1), 1)
            interior = (hp >= 1) & (hp <= h_out) & (wp >= 1) & (wp <= w_out)
            xw = jnp.where(interior, act, 0.0).astype(compute_dtype)

        tc = y_ref.shape[-1]
        acc = jnp.zeros((th * w_out, tc), jnp.float32)
        for kh in range(3):
            xs = xw[kh:kh + th]                         # (th, W+2, Cin)
            for kw in range(3):
                a = xs[:, kw:kw + w_out, :].reshape(th * w_out, cin)
                acc = acc + jnp.dot(a, w_ref[kh * 3 + kw],
                                    preferred_element_type=jnp.float32)

        y_ref[...] = acc.reshape(1, th, w_out, tc)
        s = jnp.sum(acc, axis=0, keepdims=True)
        sq = jnp.sum(acc * acc, axis=0, keepdims=True)
        st_ref[...] = jnp.concatenate([s, sq], axis=0).reshape(1, 1, 2, tc)

    if fuse_affine:
        def kernel(xm_ref, xa_ref, xb_ref, w_ref, aff_ref, y_ref, st_ref):
            body(xm_ref, xa_ref, xb_ref, w_ref, aff_ref, y_ref, st_ref)
    else:
        def kernel(xm_ref, xa_ref, xb_ref, w_ref, y_ref, st_ref):
            body(xm_ref, xa_ref, xb_ref, w_ref, None, y_ref, st_ref)
    return kernel


def conv3x3_stats_pass(x_pad, w_taps, affine_in, *, row_block, compute_dtype,
                       vmem_limit):
    """x_pad:  (N, H+2, W+2, Cin) spatially zero-padded raw input.
       w_taps: (9, Cin, Cp) packed 3x3 weights, Cp % 128 == 0.
       affine_in: None, or (2, Cin) f32 [scale; shift] fused (+ReLU) on load.
       Returns y_raw (N, H, W, Cp) f32 and per-channel [sum; sum_sq] (2, Cp)."""
    n, hp2, wp2, cin = x_pad.shape
    h, w = hp2 - 2, wp2 - 2
    cp = w_taps.shape[-1]
    th = row_block
    assert h % th == 0, (h, th)
    nblk = h // th
    tc = _choose_channel_tile(cp)
    nct = cp // tc

    kernel = _make_conv_pass1_kernel(
        th=th, h_out=h, w_out=w, fuse_affine=affine_in is not None,
        compute_dtype=compute_dtype)

    in_specs = [
        # Main th-row window of the padded input: rows [i*th, i*th+th).
        pl.BlockSpec((1, th, w + 2, cin), lambda b, i, c: (b, i, 0, 0)),
        # Two single-row halo windows (rows (i+1)*th and (i+1)*th+1): the
        # SAME x_pad array is passed three times, so taps are formed
        # in-kernel with ~1x activation HBM traffic (no wrapper im2col).
        pl.BlockSpec((1, 1, w + 2, cin),
                     lambda b, i, c: (b, (i + 1) * th, 0, 0)),
        pl.BlockSpec((1, 1, w + 2, cin),
                     lambda b, i, c: (b, (i + 1) * th + 1, 0, 0)),
        # Packed weights, tiled along output channels (innermost grid axis,
        # so the activation window stays resident across channel tiles).
        pl.BlockSpec((9, cin, tc), lambda b, i, c: (0, 0, c)),
    ]
    args = [x_pad, x_pad, x_pad, w_taps]
    if affine_in is not None:
        in_specs.append(pl.BlockSpec((2, cin), lambda b, i, c: (0, 0)))
        args.append(affine_in.astype(jnp.float32))

    out_shape = (jax.ShapeDtypeStruct((n, h, w, cp), jnp.float32),
                 jax.ShapeDtypeStruct((n, nblk, 2, cp), jnp.float32))
    out_specs = (pl.BlockSpec((1, th, w, tc), lambda b, i, c: (b, i, 0, c)),
                 pl.BlockSpec((1, 1, 2, tc), lambda b, i, c: (b, i, 0, c)))

    itemsize = x_pad.dtype.itemsize
    cost = pl.CostEstimate(
        flops=2 * n * h * w * 9 * cin * cp, transcendentals=0,
        bytes_accessed=(itemsize * (x_pad.size + 9 * cin * cp)
                        + 4 * (n * h * w * cp + n * nblk * 2 * cp)))

    y_raw, stats = pl.pallas_call(
        kernel,
        out_shape=out_shape,
        grid=(n, nblk, nct),
        in_specs=in_specs,
        out_specs=out_specs,
        compiler_params=pltpu.CompilerParams(
            # Stats are per-tile outputs (no cross-tile accumulator), so every
            # axis is parallel -> v7x megacore can shard any of them.
            dimension_semantics=("parallel", "parallel", "parallel"),
            vmem_limit_bytes=vmem_limit),
        cost_estimate=cost,
    )(*args)

    return y_raw, jnp.sum(stats, axis=(0, 1))


# ---------------------------------------------------------------------------
# Pass 2 (final stage only): normalize (folded BN affine) + ReLU, large tiles.
# ---------------------------------------------------------------------------
def _bn_relu_kernel(y_ref, aff_ref, o_ref):
    y = y_ref[...].astype(jnp.float32)
    o_ref[...] = jnp.maximum(y * aff_ref[0:1, :] + aff_ref[1:2, :], 0.0)


def bn_relu_pass(y_flat, affine, *, vmem_limit):
    m, cp = y_flat.shape
    tm = _pick_flat_tile(m)        # up to 2048 rows: memory-bound, big tiles
    cost = pl.CostEstimate(flops=3 * m * cp, transcendentals=0,
                           bytes_accessed=4 * 2 * m * cp)
    return pl.pallas_call(
        _bn_relu_kernel,
        out_shape=jax.ShapeDtypeStruct((m, cp), jnp.float32),
        grid=(m // tm,),
        in_specs=[pl.BlockSpec((tm, cp), lambda i: (i, 0)),
                  pl.BlockSpec((2, cp), lambda i: (0, 0))],
        out_specs=pl.BlockSpec((tm, cp), lambda i: (i, 0)),
        compiler_params=pltpu.CompilerParams(
            dimension_semantics=("parallel",),
            vmem_limit_bytes=vmem_limit),
        cost_estimate=cost,
    )(y_flat, affine.astype(jnp.float32))


# ---------------------------------------------------------------------------
# Wrapper-side parameter packing / BN finalize
# ---------------------------------------------------------------------------
def _bn_affine_from_sums(sums, gamma_p, beta_p, m):
    mean = sums[0] / m
    var = jnp.maximum(sums[1] / m - mean * mean, 0.0)   # clamp tiny negatives
    scale = gamma_p * lax.rsqrt(var + BN_EPS)
    shift = beta_p - mean * scale
    return jnp.stack([scale, shift], axis=0)            # (2, Cp)


def _pack_weight(w_oihw, cp):
    """PyTorch (Cout, Cin, 3, 3) -> (9, Cin, Cp): tap-major, zero-padded Cout."""
    cout, cin = w_oihw.shape[0], w_oihw.shape[1]
    w_taps = jnp.transpose(w_oihw, (2, 3, 1, 0)).reshape(9, cin, cout)
    return jnp.pad(w_taps, ((0, 0), (0, 0), (0, cp - cout)))


def _pad_vec(v, cp):
    return jnp.pad(v, (0, cp - v.shape[0]))


def double_conv_forward(x_nchw, params, *, compute_dtype=jnp.float32,
                        row_block=None):
    """Exact forward of DoubleConv (fresh module, training-mode BatchNorm)."""
    n, _, h, w = x_nchw.shape
    cmid = params["w1"].shape[0]
    cout = params["w2"].shape[0]
    cp1 = _round_up(max(cmid, LANES), LANES)
    cp2 = _round_up(max(cout, LANES), LANES)
    m = n * h * w
    vmem_limit = _default_vmem_limit()
    th = _choose_row_block(h, w, row_block)

    x = jnp.transpose(x_nchw, (0, 2, 3, 1))                       # NCHW->NHWC
    x_pad = jnp.pad(x, ((0, 0), (1, 1), (1, 1), (0, 0))).astype(compute_dtype)

    # ---- Stage 1: conv1 GEMM + per-tile BN statistics ---------------------
    # The Conv2d bias only shifts the per-channel mean, which training-mode
    # BatchNorm subtracts exactly -> it cancels and is never added here.
    w1 = _pack_weight(params["w1"], cp1).astype(compute_dtype)
    y1_raw, sums1 = conv3x3_stats_pass(
        x_pad, w1, None, row_block=th, compute_dtype=compute_dtype,
        vmem_limit=vmem_limit)
    affine1 = _bn_affine_from_sums(sums1, _pad_vec(params["g1"], cp1),
                                   _pad_vec(params["beta1"], cp1), m)

    # ---- Stage 2: conv2 GEMM with stage-1 BN/ReLU fused on the tap load ---
    # (saves a full HBM read+write of the post-BN (M, Cmid) activation)
    y1_pad = jnp.pad(y1_raw[..., :cmid],
                     ((0, 0), (1, 1), (1, 1), (0, 0))).astype(compute_dtype)
    w2 = _pack_weight(params["w2"], cp2).astype(compute_dtype)
    y2_raw, sums2 = conv3x3_stats_pass(
        y1_pad, w2, affine1[:, :cmid], row_block=th,
        compute_dtype=compute_dtype, vmem_limit=vmem_limit)
    affine2 = _bn_affine_from_sums(sums2, _pad_vec(params["g2"], cp2),
                                   _pad_vec(params["beta2"], cp2), m)

    # ---- Final BatchNorm + ReLU (memory-bound, large tiles) ---------------
    z = bn_relu_pass(y2_raw.reshape(m, cp2), affine2, vmem_limit=vmem_limit)
    out = z[:, :cout].reshape(n, h, w, cout)
    return jnp.transpose(out, (0, 3, 1, 2))                       # NHWC->NCHW


# ---------------------------------------------------------------------------
# Pure-JAX reference (with conv bias, training-mode BatchNorm) for validation
# ---------------------------------------------------------------------------
def _reference_forward(x_nchw, params):
    def conv(x, w, b):
        y = lax.conv_general_dilated(
            x, w, window_strides=(1, 1), padding=((1, 1), (1, 1)),
            dimension_numbers=("NCHW", "OIHW", "NCHW"))
        return y + b.reshape(1, -1, 1, 1)

    def bn_relu(y, g, beta):
        mean = jnp.mean(y, axis=(0, 2, 3), keepdims=True)
        var = jnp.mean(jnp.square(y - mean), axis=(0, 2, 3), keepdims=True)
        z = (y - mean) * lax.rsqrt(var + BN_EPS)
        z = z * g.reshape(1, -1, 1, 1) + beta.reshape(1, -1, 1, 1)
        return jnp.maximum(z, 0.0)

    y = bn_relu(conv(x_nchw, params["w1"], params["b1"]),
                params["g1"], params["beta1"])
    y = bn_relu(conv(y, params["w2"], params["b2"]),
                params["g2"], params["beta2"])
    return y


if __name__ == "__main__":
    in_channels, out_channels = 3, 2
    mid_channels = out_channels          # DoubleConv default: mid = out
    N, H, W = 2, 16, 16

    key = jax.random.PRNGKey(0)
    ks = jax.random.split(key, 9)
    params = {
        "w1": 0.2 * jax.random.normal(ks[0], (mid_channels, in_channels, 3, 3), jnp.float32),
        "b1": 0.1 * jax.random.normal(ks[1], (mid_channels,), jnp.float32),
        "g1": 1.0 + 0.1 * jax.random.normal(ks[2], (mid_channels,), jnp.float32),
        "beta1": 0.1 * jax.random.normal(ks[3], (mid_channels,), jnp.float32),
        "w2": 0.2 * jax.random.normal(ks[4], (out_channels, mid_channels, 3, 3), jnp.float32),
        "b2": 0.1 * jax.random.normal(ks[5], (out_channels,), jnp.float32),
        "g2": 1.0 + 0.1 * jax.random.normal(ks[6], (out_channels,), jnp.float32),
        "beta2": 0.1 * jax.random.normal(ks[7], (out_channels,), jnp.float32),
    }
    x = jax.random.normal(ks[8], (N, in_channels, H, W), jnp.float32)

    ref = jax.block_until_ready(_reference_forward(x, params))

    # f32 path: row_block=4 forces 4 H-blocks per image so the halo loads,
    # per-tile statistics and the wrapper-side reduction are all exercised.
    fwd = jax.jit(functools.partial(double_conv_forward,
                                    compute_dtype=jnp.float32, row_block=4))
    out = jax.block_until_ready(fwd(x, params))
    assert out.shape == (N, out_channels, H, W), out.shape
    assert jnp.allclose(out, ref, rtol=1e-4, atol=1e-4), \
        float(jnp.max(jnp.abs(out - ref)))

    # bf16 MXU-operand path (production setting for v6e/v7x per the review):
    # loose sanity bound only; tight validation is the f32 run above.
    fwd_bf16 = jax.jit(functools.partial(double_conv_forward,
                                         compute_dtype=jnp.bfloat16))
    out_bf16 = jax.block_until_ready(fwd_bf16(x, params))
    assert out_bf16.shape == (N, out_channels, H, W)
    assert float(jnp.max(jnp.abs(out_bf16.astype(jnp.float32) - ref))) < 0.3

    print("KERNEL_OK")
</pallas_src>

<mosaic_0001>
module attributes {stable_mosaic.version = 11 : i64} {
  func.func @_bn_relu_kernel(%arg0: i32, %arg1: memref<512x128xf32, #tpu.memory_space<vmem>>, %arg2: memref<2x128xf32, #tpu.memory_space<vmem>>, %arg3: memref<512x128xf32, #tpu.memory_space<vmem>>) attributes {dimension_semantics = [#tpu.dimension_semantics<parallel>], iteration_bounds = array<i64: 1>, scalar_prefetch = 0 : i64, scratch_operands = 0 : i64, tpu.core_type = #tpu.core_type<tc>, window_params = [{transform_indices = @transform_0, window_bounds = array<i64: 512, 128>}, {pipeline_mode = #tpu.pipeline_mode<synchronous>, transform_indices = @transform_1, window_bounds = array<i64: 2, 128>}, {transform_indices = @transform_2, window_bounds = array<i64: 512, 128>}]} {
    %c0 = arith.constant 0 : index
    %c0_0 = arith.constant 0 : index
    %0 = vector.load %arg1[%c0, %c0_0] : memref<512x128xf32, #tpu.memory_space<vmem>>, vector<512x128xf32>
    %c0_1 = arith.constant 0 : index
    %c0_2 = arith.constant 0 : index
    %1 = vector.load %arg2[%c0_1, %c0_2] : memref<2x128xf32, #tpu.memory_space<vmem>>, vector<1x128xf32>
    %2 = vector.broadcast %1 : vector<1x128xf32> to vector<512x128xf32>
    %3 = arith.mulf %0, %2 : vector<512x128xf32>
    %c1 = arith.constant 1 : index
    %c0_3 = arith.constant 0 : index
    %4 = vector.load %arg2[%c1, %c0_3] : memref<2x128xf32, #tpu.memory_space<vmem>>, vector<1x128xf32>
    %5 = vector.broadcast %4 : vector<1x128xf32> to vector<512x128xf32>
    %6 = arith.addf %3, %5 : vector<512x128xf32>
    %cst = arith.constant 0.000000e+00 : f32
    %7 = vector.broadcast %cst : f32 to vector<512x128xf32>
    %8 = arith.maximumf %6, %7 : vector<512x128xf32>
    %c0_4 = arith.constant 0 : index
    %c0_5 = arith.constant 0 : index
    %9 = vector.load %arg3[%c0_4, %c0_5] : memref<512x128xf32, #tpu.memory_space<vmem>>, vector<512x128xf32>
    tpu.vector_store %arg3[%c0_4, %c0_5], %8 {strides = array<i32>} : memref<512x128xf32, #tpu.memory_space<vmem>>, vector<512x128xf32>,
    return
  }
  func.func @transform_0(%arg0: i32) -> (i32, i32) {
    %c0_i32 = arith.constant 0 : i32
    %c0_i32_0 = arith.constant 0 : i32
    return %arg0, %c0_i32 : i32, i32
  }
  func.func @transform_1(%arg0: i32) -> (i32, i32) {
    %c0_i32 = arith.constant 0 : i32
    %c0_i32_0 = arith.constant 0 : i32
    %c0_i32_1 = arith.constant 0 : i32
    return %c0_i32, %c0_i32_0 : i32, i32
  }
  func.func @transform_2(%arg0: i32) -> (i32, i32) {
    %c0_i32 = arith.constant 0 : i32
    %c0_i32_0 = arith.constant 0 : i32
    return %arg0, %c0_i32 : i32, i32
  }
}

module attributes {stable_mosaic.version = 11 : i64} {
  func.func @kernel(%arg0: i32, %arg1: i32, %arg2: i32, %arg3: memref<1x4x18x3xf32, #tpu.memory_space<vmem>>, %arg4: memref<1x1x18x3xf32, #tpu.memory_space<vmem>>, %arg5: memref<1x1x18x3xf32, #tpu.memory_space<vmem>>, %arg6: memref<9x3x128xf32, #tpu.memory_space<vmem>>, %arg7: memref<1x4x16x128xf32, #tpu.memory_space<vmem>>, %arg8: memref<1x1x2x128xf32, #tpu.memory_space<vmem>>) attributes {dimension_semantics = [#tpu.dimension_semantics<parallel>, #tpu.dimension_semantics<parallel>, #tpu.dimension_semantics<parallel>], iteration_bounds = array<i64: 2, 4, 1>, scalar_prefetch = 0 : i64, scratch_operands = 0 : i64, tpu.core_type = #tpu.core_type<tc>, window_params = [{transform_indices = @transform_0, window_bounds = array<i64: 1, 4, 18, 3>}, {transform_indices = @transform_1, window_bounds = array<i64: 1, 1, 18, 3>}, {transform_indices = @transform_2, window_bounds = array<i64: 1, 1, 18, 3>}, {transform_indices = @transform_3, window_bounds = array<i64: 9, 3, 128>}, {transform_indices = @transform_4, window_bounds = array<i64: 1, 4, 16, 128>}, {transform_indices = @transform_5, window_bounds = array<i64: 1, 1, 2, 128>}]} {
    %c0 = arith.constant 0 : index
    %c0_0 = arith.constant 0 : index
    %c0_1 = arith.constant 0 : index
    %c0_2 = arith.constant 0 : index
    %0 = vector.load %arg3[%c0, %c0_0, %c0_1, %c0_2] : memref<1x4x18x3xf32, #tpu.memory_space<vmem>>, vector<1x4x18x3xf32>
    %1 = vector.shape_cast %0 : vector<1x4x18x3xf32> to vector<4x18x3xf32>
    %c0_3 = arith.constant 0 : index
    %c0_4 = arith.constant 0 : index
    %c0_5 = arith.constant 0 : index
    %c0_6 = arith.constant 0 : index
    %2 = vector.load %arg4[%c0_3, %c0_4, %c0_5, %c0_6] : memref<1x1x18x3xf32, #tpu.memory_space<vmem>>, vector<1x1x18x3xf32>
    %3 = vector.shape_cast %2 : vector<1x1x18x3xf32> to vector<1x18x3xf32>
    %c0_7 = arith.constant 0 : index
    %c0_8 = arith.constant 0 : index
    %c0_9 = arith.constant 0 : index
    %c0_10 = arith.constant 0 : index
    %4 = vector.load %arg5[%c0_7, %c0_8, %c0_9, %c0_10] : memref<1x1x18x3xf32, #tpu.memory_space<vmem>>, vector<1x1x18x3xf32>
    %5 = vector.shape_cast %4 : vector<1x1x18x3xf32> to vector<1x18x3xf32>
    %6 = tpu.concatenate %1, %3, %5 in 0 : vector<4x18x3xf32>, vector<1x18x3xf32>, vector<1x18x3xf32> -> vector<6x18x3xf32>
    %cst = arith.constant 0.000000e+00 : f32
    %7 = vector.broadcast %cst : f32 to vector<64x128xf32>
    %8 = vector.extract_strided_slice %6 {offsets = [0, 0, 0], sizes = [4, 18, 3], strides = [1, 1, 1]} : vector<6x18x3xf32> to vector<4x18x3xf32>
    %9 = vector.extract_strided_slice %8 {offsets = [0, 0, 0], sizes = [4, 16, 3], strides = [1, 1, 1]} : vector<4x18x3xf32> to vector<4x16x3xf32>
    %10 = vector.shape_cast %9 : vector<4x16x3xf32> to vector<64x3xf32>
    %c0_11 = arith.constant 0 : index
    %c0_12 = arith.constant 0 : index
    %c0_13 = arith.constant 0 : index
    %11 = vector.load %arg6[%c0_11, %c0_12, %c0_13] : memref<9x3x128xf32, #tpu.memory_space<vmem>>, vector<1x3x128xf32>
    %12 = vector.shape_cast %11 : vector<1x3x128xf32> to vector<3x128xf32>
    %cst_14 = arith.constant dense<0.000000e+00> : vector<64x128xf32>
    %13 = tpu.matmul %10, %12, %cst_14 {dimension_numbers = #tpu.dot_dimension_numbers<[1], [0], [0], [1], [0, 0, 1, 1], [], []>} : vector<64x3xf32>, vector<3x128xf32>, vector<64x128xf32> -> vector<64x128xf32>
    %14 = arith.addf %7, %13 : vector<64x128xf32>
    %15 = vector.extract_strided_slice %8 {offsets = [0, 1, 0], sizes = [4, 16, 3], strides = [1, 1, 1]} : vector<4x18x3xf32> to vector<4x16x3xf32>
    %16 = vector.shape_cast %15 : vector<4x16x3xf32> to vector<64x3xf32>
    %c1 = arith.constant 1 : index
    %c0_15 = arith.constant 0 : index
    %c0_16 = arith.constant 0 : index
    %17 = vector.load %arg6[%c1, %c0_15, %c0_16] : memref<9x3x128xf32, #tpu.memory_space<vmem>>, vector<1x3x128xf32>
    %18 = vector.shape_cast %17 : vector<1x3x128xf32> to vector<3x128xf32>
    %cst_17 = arith.constant dense<0.000000e+00> : vector<64x128xf32>
    %19 = tpu.matmul %16, %18, %cst_17 {dimension_numbers = #tpu.dot_dimension_numbers<[1], [0], [0], [1], [0, 0, 1, 1], [], []>} : vector<64x3xf32>, vector<3x128xf32>, vector<64x128xf32> -> vector<64x128xf32>
    %20 = arith.addf %14, %19 : vector<64x128xf32>
    %21 = vector.extract_strided_slice %8 {offsets = [0, 2, 0], sizes = [4, 16, 3], strides = [1, 1, 1]} : vector<4x18x3xf32> to vector<4x16x3xf32>
    %22 = vector.shape_cast %21 : vector<4x16x3xf32> to vector<64x3xf32>
    %c2 = arith.constant 2 : index
    %c0_18 = arith.constant 0 : index
    %c0_19 = arith.constant 0 : index
    %23 = vector.load %arg6[%c2, %c0_18, %c0_19] : memref<9x3x128xf32, #tpu.memory_space<vmem>>, vector<1x3x128xf32>
    %24 = vector.shape_cast %23 : vector<1x3x128xf32> to vector<3x128xf32>
    %cst_20 = arith.constant dense<0.000000e+00> : vector<64x128xf32>
    %25 = tpu.matmul %22, %24, %cst_20 {dimension_numbers = #tpu.dot_dimension_numbers<[1], [0], [0], [1], [0, 0, 1, 1], [], []>} : vector<64x3xf32>, vector<3x128xf32>, vector<64x128xf32> -> vector<64x128xf32>
    %26 = arith.addf %20, %25 : vector<64x128xf32>
    %27 = vector.extract_strided_slice %6 {offsets = [1, 0, 0], sizes = [4, 18, 3], strides = [1, 1, 1]} : vector<6x18x3xf32> to vector<4x18x3xf32>
    %28 = vector.extract_strided_slice %27 {offsets = [0, 0, 0], sizes = [4, 16, 3], strides = [1, 1, 1]} : vector<4x18x3xf32> to vector<4x16x3xf32>
    %29 = vector.shape_cast %28 : vector<4x16x3xf32> to vector<64x3xf32>
    %c3 = arith.constant 3 : index
    %c0_21 = arith.constant 0 : index
    %c0_22 = arith.constant 0 : index
    %30 = vector.load %arg6[%c3, %c0_21, %c0_22] : memref<9x3x128xf32, #tpu.memory_space<vmem>>, vector<1x3x128xf32>
    %31 = vector.shape_cast %30 : vector<1x3x128xf32> to vector<3x128xf32>
    %cst_23 = arith.constant dense<0.000000e+00> : vector<64x128xf32>
    %32 = tpu.matmul %29, %31, %cst_23 {dimension_numbers = #tpu.dot_dimension_numbers<[1], [0], [0], [1], [0, 0, 1, 1], [], []>} : vector<64x3xf32>, vector<3x128xf32>, vector<64x128xf32> -> vector<64x128xf32>
    %33 = arith.addf %26, %32 : vector<64x128xf32>
    %34 = vector.extract_strided_slice %27 {offsets = [0, 1, 0], sizes = [4, 16, 3], strides = [1, 1, 1]} : vector<4x18x3xf32> to vector<4x16x3xf32>
    %35 = vector.shape_cast %34 : vector<4x16x3xf32> to vector<64x3xf32>
    %c4 = arith.constant 4 : index
    %c0_24 = arith.constant 0 : index
    %c0_25 = arith.constant 0 : index
    %36 = vector.load %arg6[%c4, %c0_24, %c0_25] : memref<9x3x128xf32, #tpu.memory_space<vmem>>, vector<1x3x128xf32>
    %37 = vector.shape_cast %36 : vector<1x3x128xf32> to vector<3x128xf32>
    %cst_26 = arith.constant dense<0.000000e+00> : vector<64x128xf32>
    %38 = tpu.matmul %35, %37, %cst_26 {dimension_numbers = #tpu.dot_dimension_numbers<[1], [0], [0], [1], [0, 0, 1, 1], [], []>} : vector<64x3xf32>, vector<3x128xf32>, vector<64x128xf32> -> vector<64x128xf32>
    %39 = arith.addf %33, %38 : vector<64x128xf32>
    %40 = vector.extract_strided_slice %27 {offsets = [0, 2, 0], sizes = [4, 16, 3], strides = [1, 1, 1]} : vector<4x18x3xf32> to vector<4x16x3xf32>
    %41 = vector.shape_cast %40 : vector<4x16x3xf32> to vector<64x3xf32>
    %c5 = arith.constant 5 : index
    %c0_27 = arith.constant 0 : index
    %c0_28 = arith.constant 0 : index
    %42 = vector.load %arg6[%c5, %c0_27, %c0_28] : memref<9x3x128xf32, #tpu.memory_space<vmem>>, vector<1x3x128xf32>
    %43 = vector.shape_cast %42 : vector<1x3x128xf32> to vector<3x128xf32>
    %cst_29 = arith.constant dense<0.000000e+00> : vector<64x128xf32>
    %44 = tpu.matmul %41, %43, %cst_29 {dimension_numbers = #tpu.dot_dimension_numbers<[1], [0], [0], [1], [0, 0, 1, 1], [], []>} : vector<64x3xf32>, vector<3x128xf32>, vector<64x128xf32> -> vector<64x128xf32>
    %45 = arith.addf %39, %44 : vector<64x128xf32>
    %46 = vector.extract_strided_slice %6 {offsets = [2, 0, 0], sizes = [4, 18, 3], strides = [1, 1, 1]} : vector<6x18x3xf32> to vector<4x18x3xf32>
    %47 = vector.extract_strided_slice %46 {offsets = [0, 0, 0], sizes = [4, 16, 3], strides = [1, 1, 1]} : vector<4x18x3xf32> to vector<4x16x3xf32>
    %48 = vector.shape_cast %47 : vector<4x16x3xf32> to vector<64x3xf32>
    %c6 = arith.constant 6 : index
    %c0_30 = arith.constant 0 : index
    %c0_31 = arith.constant 0 : index
    %49 = vector.load %arg6[%c6, %c0_30, %c0_31] : memref<9x3x128xf32, #tpu.memory_space<vmem>>, vector<1x3x128xf32>
    %50 = vector.shape_cast %49 : vector<1x3x128xf32> to vector<3x128xf32>
    %cst_32 = arith.constant dense<0.000000e+00> : vector<64x128xf32>
    %51 = tpu.matmul %48, %50, %cst_32 {dimension_numbers = #tpu.dot_dimension_numbers<[1], [0], [0], [1], [0, 0, 1, 1], [], []>} : vector<64x3xf32>, vector<3x128xf32>, vector<64x128xf32> -> vector<64x128xf32>
    %52 = arith.addf %45, %51 : vector<64x128xf32>
    %53 = vector.extract_strided_slice %46 {offsets = [0, 1, 0], sizes = [4, 16, 3], strides = [1, 1, 1]} : vector<4x18x3xf32> to vector<4x16x3xf32>
    %54 = vector.shape_cast %53 : vector<4x16x3xf32> to vector<64x3xf32>
    %c7 = arith.constant 7 : index
    %c0_33 = arith.constant 0 : index
    %c0_34 = arith.constant 0 : index
    %55 = vector.load %arg6[%c7, %c0_33, %c0_34] : memref<9x3x128xf32, #tpu.memory_space<vmem>>, vector<1x3x128xf32>
    %56 = vector.shape_cast %55 : vector<1x3x128xf32> to vector<3x128xf32>
    %cst_35 = arith.constant dense<0.000000e+00> : vector<64x128xf32>
    %57 = tpu.matmul %54, %56, %cst_35 {dimension_numbers = #tpu.dot_dimension_numbers<[1], [0], [0], [1], [0, 0, 1, 1], [], []>} : vector<64x3xf32>, vector<3x128xf32>, vector<64x128xf32> -> vector<64x128xf32>
    %58 = arith.addf %52, %57 : vector<64x128xf32>
    %59 = vector.extract_strided_slice %46 {offsets = [0, 2, 0], sizes = [4, 16, 3], strides = [1, 1, 1]} : vector<4x18x3xf32> to vector<4x16x3xf32>
    %60 = vector.shape_cast %59 : vector<4x16x3xf32> to vector<64x3xf32>
    %c8 = arith.constant 8 : index
    %c0_36 = arith.constant 0 : index
    %c0_37 = arith.constant 0 : index
    %61 = vector.load %arg6[%c8, %c0_36, %c0_37] : memref<9x3x128xf32, #tpu.memory_space<vmem>>, vector<1x3x128xf32>
    %62 = vector.shape_cast %61 : vector<1x3x128xf32> to vector<3x128xf32>
    %cst_38 = arith.constant dense<0.000000e+00> : vector<64x128xf32>
    %63 = tpu.matmul %60, %62, %cst_38 {dimension_numbers = #tpu.dot_dimension_numbers<[1], [0], [0], [1], [0, 0, 1, 1], [], []>} : vector<64x3xf32>, vector<3x128xf32>, vector<64x128xf32> -> vector<64x128xf32>
    %64 = arith.addf %58, %63 : vector<64x128xf32>
    %65 = vector.shape_cast %64 : vector<64x128xf32> to vector<1x4x16x128xf32>
    %c0_39 = arith.constant 0 : index
    %c0_40 = arith.constant 0 : index
    %c0_41 = arith.constant 0 : index
    %c0_42 = arith.constant 0 : index
    %66 = vector.load %arg7[%c0_39, %c0_40, %c0_41, %c0_42] : memref<1x4x16x128xf32, #tpu.memory_space<vmem>>, vector<1x4x16x128xf32>
    tpu.vector_store %arg7[%c0_39, %c0_40, %c0_41, %c0_42], %65 {strides = array<i32>} : memref<1x4x16x128xf32, #tpu.memory_space<vmem>>, vector<1x4x16x128xf32>,
    %cst_43 = arith.constant dense<0.000000e+00> : vector<128xf32>
    %67 = vector.multi_reduction <add>, %64, %cst_43 [0] : vector<64x128xf32> to vector<128xf32>
    %68 = vector.shape_cast %67 : vector<128xf32> to vector<1x128xf32>
    %69 = arith.mulf %64, %64 : vector<64x128xf32>
    %cst_44 = arith.constant dense<0.000000e+00> : vector<128xf32>
    %70 = vector.multi_reduction <add>, %69, %cst_44 [0] : vector<64x128xf32> to vector<128xf32>
    %71 = vector.shape_cast %70 : vector<128xf32> to vector<1x128xf32>
    %72 = tpu.concatenate %68, %71 in 0 : vector<1x128xf32>, vector<1x128xf32> -> vector<2x128xf32>
    %73 = vector.shape_cast %72 : vector<2x128xf32> to vector<1x1x2x128xf32>
    %c0_45 = arith.constant 0 : index
    %c0_46 = arith.constant 0 : index
    %c0_47 = arith.constant 0 : index
    %c0_48 = arith.constant 0 : index
    %74 = vector.load %arg8[%c0_45, %c0_46, %c0_47, %c0_48] : memref<1x1x2x128xf32, #tpu.memory_space<vmem>>, vector<1x1x2x128xf32>
    tpu.vector_store %arg8[%c0_45, %c0_46, %c0_47, %c0_48], %73 {strides = array<i32>} : memref<1x1x2x128xf32, #tpu.memory_space<vmem>>, vector<1x1x2x128xf32>,
    return
  }
  func.func @transform_0(%arg0: i32, %arg1: i32, %arg2: i32) -> (i32, i32, i32, i32) {
    %c0_i32 = arith.constant 0 : i32
    %c0_i32_0 = arith.constant 0 : i32
    %c0_i32_1 = arith.constant 0 : i32
    return %arg0, %arg1, %c0_i32, %c0_i32_0 : i32, i32, i32, i32
  }
  func.func @transform_1(%arg0: i32, %arg1: i32, %arg2: i32) -> (i32, i32, i32, i32) {
    %c1_i32 = arith.constant 1 : i32
    %0 = arith.addi %arg1, %c1_i32 : i32
    %c4_i32 = arith.constant 4 : i32
    %1 = arith.muli %0, %c4_i32 : i32
    %c0_i32 = arith.constant 0 : i32
    %c0_i32_0 = arith.constant 0 : i32
    %c0_i32_1 = arith.constant 0 : i32
    return %arg0, %1, %c0_i32, %c0_i32_0 : i32, i32, i32, i32
  }
  func.func @transform_2(%arg0: i32, %arg1: i32, %arg2: i32) -> (i32, i32, i32, i32) {
    %c1_i32 = arith.constant 1 : i32
    %0 = arith.addi %arg1, %c1_i32 : i32
    %c4_i32 = arith.constant 4 : i32
    %1 = arith.muli %0, %c4_i32 : i32
    %c1_i32_0 = arith.constant 1 : i32
    %2 = arith.addi %1, %c1_i32_0 : i32
    %c0_i32 = arith.constant 0 : i32
    %c0_i32_1 = arith.constant 0 : i32
    %c0_i32_2 = arith.constant 0 : i32
    return %arg0, %2, %c0_i32, %c0_i32_1 : i32, i32, i32, i32
  }
  func.func @transform_3(%arg0: i32, %arg1: i32, %arg2: i32) -> (i32, i32, i32) {
    %c0_i32 = arith.constant 0 : i32
    %c0_i32_0 = arith.constant 0 : i32
    %c0_i32_1 = arith.constant 0 : i32
    return %c0_i32, %c0_i32_0, %arg2 : i32, i32, i32
  }
  func.func @transform_4(%arg0: i32, %arg1: i32, %arg2: i32) -> (i32, i32, i32, i32) {
    %c0_i32 = arith.constant 0 : i32
    %c0_i32_0 = arith.constant 0 : i32
    return %arg0, %arg1, %c0_i32, %arg2 : i32, i32, i32, i32
  }
  func.func @transform_5(%arg0: i32, %arg1: i32, %arg2: i32) -> (i32, i32, i32, i32) {
    %c0_i32 = arith.constant 0 : i32
    %c0_i32_0 = arith.constant 0 : i32
    return %arg0, %arg1, %c0_i32, %arg2 : i32, i32, i32, i32
  }
}

module attributes {stable_mosaic.version = 11 : i64} {
  func.func @kernel(%arg0: i32, %arg1: i32, %arg2: i32, %arg3: memref<1x4x18x2xf32, #tpu.memory_space<vmem>>, %arg4: memref<1x1x18x2xf32, #tpu.memory_space<vmem>>, %arg5: memref<1x1x18x2xf32, #tpu.memory_space<vmem>>, %arg6: memref<9x2x128xf32, #tpu.memory_space<vmem>>, %arg7: memref<2x2xf32, #tpu.memory_space<vmem>>, %arg8: memref<1x4x16x128xf32, #tpu.memory_space<vmem>>, %arg9: memref<1x1x2x128xf32, #tpu.memory_space<vmem>>) attributes {dimension_semantics = [#tpu.dimension_semantics<parallel>, #tpu.dimension_semantics<parallel>, #tpu.dimension_semantics<parallel>], iteration_bounds = array<i64: 2, 4, 1>, scalar_prefetch = 0 : i64, scratch_operands = 0 : i64, tpu.core_type = #tpu.core_type<tc>, window_params = [{transform_indices = @transform_0, window_bounds = array<i64: 1, 4, 18, 2>}, {transform_indices = @transform_1, window_bounds = array<i64: 1, 1, 18, 2>}, {transform_indices = @transform_2, window_bounds = array<i64: 1, 1, 18, 2>}, {transform_indices = @transform_3, window_bounds = array<i64: 9, 2, 128>}, {pipeline_mode = #tpu.pipeline_mode<synchronous>, transform_indices = @transform_4, window_bounds = array<i64: 2, 2>}, {transform_indices = @transform_5, window_bounds = array<i64: 1, 4, 16, 128>}, {transform_indices = @transform_6, window_bounds = array<i64: 1, 1, 2, 128>}]} {
    %c0 = arith.constant 0 : index
    %c0_0 = arith.constant 0 : index
    %c0_1 = arith.constant 0 : index
    %c0_2 = arith.constant 0 : index
    %0 = vector.load %arg3[%c0, %c0_0, %c0_1, %c0_2] : memref<1x4x18x2xf32, #tpu.memory_space<vmem>>, vector<1x4x18x2xf32>
    %1 = vector.shape_cast %0 : vector<1x4x18x2xf32> to vector<4x18x2xf32>
    %c0_3 = arith.constant 0 : index
    %c0_4 = arith.constant 0 : index
    %c0_5 = arith.constant 0 : index
    %c0_6 = arith.constant 0 : index
    %2 = vector.load %arg4[%c0_3, %c0_4, %c0_5, %c0_6] : memref<1x1x18x2xf32, #tpu.memory_space<vmem>>, vector<1x1x18x2xf32>
    %3 = vector.shape_cast %2 : vector<1x1x18x2xf32> to vector<1x18x2xf32>
    %c0_7 = arith.constant 0 : index
    %c0_8 = arith.constant 0 : index
    %c0_9 = arith.constant 0 : index
    %c0_10 = arith.constant 0 : index
    %4 = vector.load %arg5[%c0_7, %c0_8, %c0_9, %c0_10] : memref<1x1x18x2xf32, #tpu.memory_space<vmem>>, vector<1x1x18x2xf32>
    %5 = vector.shape_cast %4 : vector<1x1x18x2xf32> to vector<1x18x2xf32>
    %6 = tpu.concatenate %1, %3, %5 in 0 : vector<4x18x2xf32>, vector<1x18x2xf32>, vector<1x18x2xf32> -> vector<6x18x2xf32>
    %c0_11 = arith.constant 0 : index
    %c0_12 = arith.constant 0 : index
    %7 = vector.load %arg7[%c0_11, %c0_12] : memref<2x2xf32, #tpu.memory_space<vmem>>, vector<1x2xf32>
    %8 = vector.shape_cast %7 : vector<1x2xf32> to vector<1x1x2xf32>
    %c1 = arith.constant 1 : index
    %c0_13 = arith.constant 0 : index
    %9 = vector.load %arg7[%c1, %c0_13] : memref<2x2xf32, #tpu.memory_space<vmem>>, vector<1x2xf32>
    %10 = vector.shape_cast %9 : vector<1x2xf32> to vector<1x1x2xf32>
    %11 = vector.broadcast %8 : vector<1x1x2xf32> to vector<6x18x2xf32>
    %12 = arith.mulf %6, %11 : vector<6x18x2xf32>
    %13 = vector.broadcast %10 : vector<1x1x2xf32> to vector<6x18x2xf32>
    %14 = arith.addf %12, %13 : vector<6x18x2xf32>
    %cst = arith.constant 0.000000e+00 : f32
    %15 = vector.broadcast %cst : f32 to vector<6x18x2xf32>
    %16 = arith.maximumf %14, %15 : vector<6x18x2xf32>
    %c4_i32 = arith.constant 4 : i32
    %17 = arith.muli %arg1, %c4_i32 : i32
    %18 = tpu.iota {dimensions = array<i32: 0>} : vector<6x18x1xi32>
    %19 = vector.broadcast %17 : i32 to vector<6x18x1xi32>
    %20 = arith.addi %19, %18 : vector<6x18x1xi32>
    %21 = tpu.iota {dimensions = array<i32: 1>} : vector<6x18x1xi32>
    %c1_i32 = arith.constant 1 : i32
    %22 = vector.broadcast %c1_i32 : i32 to vector<6x18x1xi32>
    %23 = arith.cmpi sge, %20, %22 : vector<6x18x1xi32>
    %c16_i32 = arith.constant 16 : i32
    %24 = vector.broadcast %c16_i32 : i32 to vector<6x18x1xi32>
    %25 = arith.cmpi sle, %20, %24 : vector<6x18x1xi32>
    %26 = arith.andi %23, %25 : vector<6x18x1xi1>
    %c1_i32_14 = arith.constant 1 : i32
    %27 = vector.broadcast %c1_i32_14 : i32 to vector<6x18x1xi32>
    %28 = arith.cmpi sge, %21, %27 : vector<6x18x1xi32>
    %29 = arith.andi %26, %28 : vector<6x18x1xi1>
    %c16_i32_15 = arith.constant 16 : i32
    %30 = vector.broadcast %c16_i32_15 : i32 to vector<6x18x1xi32>
    %31 = arith.cmpi sle, %21, %30 : vector<6x18x1xi32>
    %32 = arith.andi %29, %31 : vector<6x18x1xi1>
    %cst_16 = arith.constant 0.000000e+00 : f32
    %33 = vector.shape_cast %32 : vector<6x18x1xi1> to vector<6x18x1xi1>
    %34 = vector.broadcast %33 : vector<6x18x1xi1> to vector<6x18x2xi1>
    %35 = vector.broadcast %cst_16 : f32 to vector<6x18x2xf32>
    %36 = arith.select %34, %16, %35 : vector<6x18x2xi1>, vector<6x18x2xf32>
    %cst_17 = arith.constant 0.000000e+00 : f32
    %37 = vector.broadcast %cst_17 : f32 to vector<64x128xf32>
    %38 = vector.extract_strided_slice %36 {offsets = [0, 0, 0], sizes = [4, 18, 2], strides = [1, 1, 1]} : vector<6x18x2xf32> to vector<4x18x2xf32>
    %39 = vector.extract_strided_slice %38 {offsets = [0, 0, 0], sizes = [4, 16, 2], strides = [1, 1, 1]} : vector<4x18x2xf32> to vector<4x16x2xf32>
    %40 = vector.shape_cast %39 : vector<4x16x2xf32> to vector<64x2xf32>
    %c0_18 = arith.constant 0 : index
    %c0_19 = arith.constant 0 : index
    %c0_20 = arith.constant 0 : index
    %41 = vector.load %arg6[%c0_18, %c0_19, %c0_20] : memref<9x2x128xf32, #tpu.memory_space<vmem>>, vector<1x2x128xf32>
    %42 = vector.shape_cast %41 : vector<1x2x128xf32> to vector<2x128xf32>
    %cst_21 = arith.constant dense<0.000000e+00> : vector<64x128xf32>
    %43 = tpu.matmul %40, %42, %cst_21 {dimension_numbers = #tpu.dot_dimension_numbers<[1], [0], [0], [1], [0, 0, 1, 1], [], []>} : vector<64x2xf32>, vector<2x128xf32>, vector<64x128xf32> -> vector<64x128xf32>
    %44 = arith.addf %37, %43 : vector<64x128xf32>
    %45 = vector.extract_strided_slice %38 {offsets = [0, 1, 0], sizes = [4, 16, 2], strides = [1, 1, 1]} : vector<4x18x2xf32> to vector<4x16x2xf32>
    %46 = vector.shape_cast %45 : vector<4x16x2xf32> to vector<64x2xf32>
    %c1_22 = arith.constant 1 : index
    %c0_23 = arith.constant 0 : index
    %c0_24 = arith.constant 0 : index
    %47 = vector.load %arg6[%c1_22, %c0_23, %c0_24] : memref<9x2x128xf32, #tpu.memory_space<vmem>>, vector<1x2x128xf32>
    %48 = vector.shape_cast %47 : vector<1x2x128xf32> to vector<2x128xf32>
    %cst_25 = arith.constant dense<0.000000e+00> : vector<64x128xf32>
    %49 = tpu.matmul %46, %48, %cst_25 {dimension_numbers = #tpu.dot_dimension_numbers<[1], [0], [0], [1], [0, 0, 1, 1], [], []>} : vector<64x2xf32>, vector<2x128xf32>, vector<64x128xf32> -> vector<64x128xf32>
    %50 = arith.addf %44, %49 : vector<64x128xf32>
    %51 = vector.extract_strided_slice %38 {offsets = [0, 2, 0], sizes = [4, 16, 2], strides = [1, 1, 1]} : vector<4x18x2xf32> to vector<4x16x2xf32>
    %52 = vector.shape_cast %51 : vector<4x16x2xf32> to vector<64x2xf32>
    %c2 = arith.constant 2 : index
    %c0_26 = arith.constant 0 : index
    %c0_27 = arith.constant 0 : index
    %53 = vector.load %arg6[%c2, %c0_26, %c0_27] : memref<9x2x128xf32, #tpu.memory_space<vmem>>, vector<1x2x128xf32>
    %54 = vector.shape_cast %53 : vector<1x2x128xf32> to vector<2x128xf32>
    %cst_28 = arith.constant dense<0.000000e+00> : vector<64x128xf32>
    %55 = tpu.matmul %52, %54, %cst_28 {dimension_numbers = #tpu.dot_dimension_numbers<[1], [0], [0], [1], [0, 0, 1, 1], [], []>} : vector<64x2xf32>, vector<2x128xf32>, vector<64x128xf32> -> vector<64x128xf32>
    %56 = arith.addf %50, %55 : vector<64x128xf32>
    %57 = vector.extract_strided_slice %36 {offsets = [1, 0, 0], sizes = [4, 18, 2], strides = [1, 1, 1]} : vector<6x18x2xf32> to vector<4x18x2xf32>
    %58 = vector.extract_strided_slice %57 {offsets = [0, 0, 0], sizes = [4, 16, 2], strides = [1, 1, 1]} : vector<4x18x2xf32> to vector<4x16x2xf32>
    %59 = vector.shape_cast %58 : vector<4x16x2xf32> to vector<64x2xf32>
    %c3 = arith.constant 3 : index
    %c0_29 = arith.constant 0 : index
    %c0_30 = arith.constant 0 : index
    %60 = vector.load %arg6[%c3, %c0_29, %c0_30] : memref<9x2x128xf32, #tpu.memory_space<vmem>>, vector<1x2x128xf32>
    %61 = vector.shape_cast %60 : vector<1x2x128xf32> to vector<2x128xf32>
    %cst_31 = arith.constant dense<0.000000e+00> : vector<64x128xf32>
    %62 = tpu.matmul %59, %61, %cst_31 {dimension_numbers = #tpu.dot_dimension_numbers<[1], [0], [0], [1], [0, 0, 1, 1], [], []>} : vector<64x2xf32>, vector<2x128xf32>, vector<64x128xf32> -> vector<64x128xf32>
    %63 = arith.addf %56, %62 : vector<64x128xf32>
    %64 = vector.extract_strided_slice %57 {offsets = [0, 1, 0], sizes = [4, 16, 2], strides = [1, 1, 1]} : vector<4x18x2xf32> to vector<4x16x2xf32>
    %65 = vector.shape_cast %64 : vector<4x16x2xf32> to vector<64x2xf32>
    %c4 = arith.constant 4 : index
    %c0_32 = arith.constant 0 : index
    %c0_33 = arith.constant 0 : index
    %66 = vector.load %arg6[%c4, %c0_32, %c0_33] : memref<9x2x128xf32, #tpu.memory_space<vmem>>, vector<1x2x128xf32>
    %67 = vector.shape_cast %66 : vector<1x2x128xf32> to vector<2x128xf32>
    %cst_34 = arith.constant dense<0.000000e+00> : vector<64x128xf32>
    %68 = tpu.matmul %65, %67, %cst_34 {dimension_numbers = #tpu.dot_dimension_numbers<[1], [0], [0], [1], [0, 0, 1, 1], [], []>} : vector<64x2xf32>, vector<2x128xf32>, vector<64x128xf32> -> vector<64x128xf32>
    %69 = arith.addf %63, %68 : vector<64x128xf32>
    %70 = vector.extract_strided_slice %57 {offsets = [0, 2, 0], sizes = [4, 16, 2], strides = [1, 1, 1]} : vector<4x18x2xf32> to vector<4x16x2xf32>
    %71 = vector.shape_cast %70 : vector<4x16x2xf32> to vector<64x2xf32>
    %c5 = arith.constant 5 : index
    %c0_35 = arith.constant 0 : index
    %c0_36 = arith.constant 0 : index
    %72 = vector.load %arg6[%c5, %c0_35, %c0_36] : memref<9x2x128xf32, #tpu.memory_space<vmem>>, vector<1x2x128xf32>
    %73 = vector.shape_cast %72 : vector<1x2x128xf32> to vector<2x128xf32>
    %cst_37 = arith.constant dense<0.000000e+00> : vector<64x128xf32>
    %74 = tpu.matmul %71, %73, %cst_37 {dimension_numbers = #tpu.dot_dimension_numbers<[1], [0], [0], [1], [0, 0, 1, 1], [], []>} : vector<64x2xf32>, vector<2x128xf32>, vector<64x128xf32> -> vector<64x128xf32>
    %75 = arith.addf %69, %74 : vector<64x128xf32>
    %76 = vector.extract_strided_slice %36 {offsets = [2, 0, 0], sizes = [4, 18, 2], strides = [1, 1, 1]} : vector<6x18x2xf32> to vector<4x18x2xf32>
    %77 = vector.extract_strided_slice %76 {offsets = [0, 0, 0], sizes = [4, 16, 2], strides = [1, 1, 1]} : vector<4x18x2xf32> to vector<4x16x2xf32>
    %78 = vector.shape_cast %77 : vector<4x16x2xf32> to vector<64x2xf32>
    %c6 = arith.constant 6 : index
    %c0_38 = arith.constant 0 : index
    %c0_39 = arith.constant 0 : index
    %79 = vector.load %arg6[%c6, %c0_38, %c0_39] : memref<9x2x128xf32, #tpu.memory_space<vmem>>, vector<1x2x128xf32>
    %80 = vector.shape_cast %79 : vector<1x2x128xf32> to vector<2x128xf32>
    %cst_40 = arith.constant dense<0.000000e+00> : vector<64x128xf32>
    %81 = tpu.matmul %78, %80, %cst_40 {dimension_numbers = #tpu.dot_dimension_numbers<[1], [0], [0], [1], [0, 0, 1, 1], [], []>} : vector<64x2xf32>, vector<2x128xf32>, vector<64x128xf32> -> vector<64x128xf32>
    %82 = arith.addf %75, %81 : vector<64x128xf32>
    %83 = vector.extract_strided_slice %76 {offsets = [0, 1, 0], sizes = [4, 16, 2], strides = [1, 1, 1]} : vector<4x18x2xf32> to vector<4x16x2xf32>
    %84 = vector.shape_cast %83 : vector<4x16x2xf32> to vector<64x2xf32>
    %c7 = arith.constant 7 : index
    %c0_41 = arith.constant 0 : index
    %c0_42 = arith.constant 0 : index
    %85 = vector.load %arg6[%c7, %c0_41, %c0_42] : memref<9x2x128xf32, #tpu.memory_space<vmem>>, vector<1x2x128xf32>
    %86 = vector.shape_cast %85 : vector<1x2x128xf32> to vector<2x128xf32>
    %cst_43 = arith.constant dense<0.000000e+00> : vector<64x128xf32>
    %87 = tpu.matmul %84, %86, %cst_43 {dimension_numbers = #tpu.dot_dimension_numbers<[1], [0], [0], [1], [0, 0, 1, 1], [], []>} : vector<64x2xf32>, vector<2x128xf32>, vector<64x128xf32> -> vector<64x128xf32>
    %88 = arith.addf %82, %87 : vector<64x128xf32>
    %89 = vector.extract_strided_slice %76 {offsets = [0, 2, 0], sizes = [4, 16, 2], strides = [1, 1, 1]} : vector<4x18x2xf32> to vector<4x16x2xf32>
    %90 = vector.shape_cast %89 : vector<4x16x2xf32> to vector<64x2xf32>
    %c8 = arith.constant 8 : index
    %c0_44 = arith.constant 0 : index
    %c0_45 = arith.constant 0 : index
    %91 = vector.load %arg6[%c8, %c0_44, %c0_45] : memref<9x2x128xf32, #tpu.memory_space<vmem>>, vector<1x2x128xf32>
    %92 = vector.shape_cast %91 : vector<1x2x128xf32> to vector<2x128xf32>
    %cst_46 = arith.constant dense<0.000000e+00> : vector<64x128xf32>
    %93 = tpu.matmul %90, %92, %cst_46 {dimension_numbers = #tpu.dot_dimension_numbers<[1], [0], [0], [1], [0, 0, 1, 1], [], []>} : vector<64x2xf32>, vector<2x128xf32>, vector<64x128xf32> -> vector<64x128xf32>
    %94 = arith.addf %88, %93 : vector<64x128xf32>
    %95 = vector.shape_cast %94 : vector<64x128xf32> to vector<1x4x16x128xf32>
    %c0_47 = arith.constant 0 : index
    %c0_48 = arith.constant 0 : index
    %c0_49 = arith.constant 0 : index
    %c0_50 = arith.constant 0 : index
    %96 = vector.load %arg8[%c0_47, %c0_48, %c0_49, %c0_50] : memref<1x4x16x128xf32, #tpu.memory_space<vmem>>, vector<1x4x16x128xf32>
    tpu.vector_store %arg8[%c0_47, %c0_48, %c0_49, %c0_50], %95 {strides = array<i32>} : memref<1x4x16x128xf32, #tpu.memory_space<vmem>>, vector<1x4x16x128xf32>,
    %cst_51 = arith.constant dense<0.000000e+00> : vector<128xf32>
    %97 = vector.multi_reduction <add>, %94, %cst_51 [0] : vector<64x128xf32> to vector<128xf32>
    %98 = vector.shape_cast %97 : vector<128xf32> to vector<1x128xf32>
    %99 = arith.mulf %94, %94 : vector<64x128xf32>
    %cst_52 = arith.constant dense<0.000000e+00> : vector<128xf32>
    %100 = vector.multi_reduction <add>, %99, %cst_52 [0] : vector<64x128xf32> to vector<128xf32>
    %101 = vector.shape_cast %100 : vector<128xf32> to vector<1x128xf32>
    %102 = tpu.concatenate %98, %101 in 0 : vector<1x128xf32>, vector<1x128xf32> -> vector<2x128xf32>
    %103 = vector.shape_cast %102 : vector<2x128xf32> to vector<1x1x2x128xf32>
    %c0_53 = arith.constant 0 : index
    %c0_54 = arith.constant 0 : index
    %c0_55 = arith.constant 0 : index
    %c0_56 = arith.constant 0 : index
    %104 = vector.load %arg9[%c0_53, %c0_54, %c0_55, %c0_56] : memref<1x1x2x128xf32, #tpu.memory_space<vmem>>, vector<1x1x2x128xf32>
    tpu.vector_store %arg9[%c0_53, %c0_54, %c0_55, %c0_56], %103 {strides = array<i32>} : memref<1x1x2x128xf32, #tpu.memory_space<vmem>>, vector<1x1x2x128xf32>,
    return
  }
  func.func @transform_0(%arg0: i32, %arg1: i32, %arg2: i32) -> (i32, i32, i32, i32) {
    %c0_i32 = arith.constant 0 : i32
    %c0_i32_0 = arith.constant 0 : i32
    %c0_i32_1 = arith.constant 0 : i32
    return %arg0, %arg1, %c0_i32, %c0_i32_0 : i32, i32, i32, i32
  }
  func.func @transform_1(%arg0: i32, %arg1: i32, %arg2: i32) -> (i32, i32, i32, i32) {
    %c1_i32 = arith.constant 1 : i32
    %0 = arith.addi %arg1, %c1_i32 : i32
    %c4_i32 = arith.constant 4 : i32
    %1 = arith.muli %0, %c4_i32 : i32
    %c0_i32 = arith.constant 0 : i32
    %c0_i32_0 = arith.constant 0 : i32
    %c0_i32_1 = arith.constant 0 : i32
    return %arg0, %1, %c0_i32, %c0_i32_0 : i32, i32, i32, i32
  }
  func.func @transform_2(%arg0: i32, %arg1: i32, %arg2: i32) -> (i32, i32, i32, i32) {
    %c1_i32 = arith.constant 1 : i32
    %0 = arith.addi %arg1, %c1_i32 : i32
    %c4_i32 = arith.constant 4 : i32
    %1 = arith.muli %0, %c4_i32 : i32
    %c1_i32_0 = arith.constant 1 : i32
    %2 = arith.addi %1, %c1_i32_0 : i32
    %c0_i32 = arith.constant 0 : i32
    %c0_i32_1 = arith.constant 0 : i32
    %c0_i32_2 = arith.constant 0 : i32
    return %arg0, %2, %c0_i32, %c0_i32_1 : i32, i32, i32, i32
  }
  func.func @transform_3(%arg0: i32, %arg1: i32, %arg2: i32) -> (i32, i32, i32) {
    %c0_i32 = arith.constant 0 : i32
    %c0_i32_0 = arith.constant 0 : i32
    %c0_i32_1 = arith.constant 0 : i32
    return %c0_i32, %c0_i32_0, %arg2 : i32, i32, i32
  }
  func.func @transform_4(%arg0: i32, %arg1: i32, %arg2: i32) -> (i32, i32) {
    %c0_i32 = arith.constant 0 : i32
    %c0_i32_0 = arith.constant 0 : i32
    %c0_i32_1 = arith.constant 0 : i32
    return %c0_i32, %c0_i32_0 : i32, i32
  }
  func.func @transform_5(%arg0: i32, %arg1: i32, %arg2: i32) -> (i32, i32, i32, i32) {
    %c0_i32 = arith.constant 0 : i32
    %c0_i32_0 = arith.constant 0 : i32
    return %arg0, %arg1, %c0_i32, %arg2 : i32, i32, i32, i32
  }
  func.func @transform_6(%arg0: i32, %arg1: i32, %arg2: i32) -> (i32, i32, i32, i32) {
    %c0_i32 = arith.constant 0 : i32
    %c0_i32_0 = arith.constant 0 : i32
    return %arg0, %arg1, %c0_i32, %arg2 : i32, i32, i32, i32
  }
}

</mosaic_0001>

<bundles_post_ra>
// kernel: double_conv_forward.5
= control target key start
LH: loop header
LB: loop body
LE: loop exit
PB: predicated region body
PF: predicated region fallthrough
CT: control target
= control target key end

     0   :  { %s884_s0 = inlined_call_operand.vmem [shape: f32[512,128], index: 0, kind: input, shape index: {}]   ;;  %s885_s1 = inlined_call_operand.vmem [shape: f32[2,128], index: 1, kind: input, shape index: {}]   ;;  %s886_s2 = inlined_call_operand.vmem [shape: f32[512,128], index: 2, kind: output, shape index: {}]  }
   0x1   :  { %v11_v0 = vld [vmem:[%s884_s0] sm:$0xff]  ;;  %v12_v4 = vld [vmem:[%s884_s0 + $0x8] sm:$0xff]  ;;  %v13_v5 = vld [vmem:[%s884_s0 + $0x10] sm:$0xff] }
   0x2   :  { %v368_v1 = vld [vmem:[%s885_s1] ss:$0 sm:$0xff]  ;;  %v373_v2 = vld [vmem:[%s885_s1 + $0x1] ss:$0 sm:$0xff]  ;;  %v14_v6 = vld [vmem:[%s884_s0 + $0x18] sm:$0xff] }
   0x3   :  { %v80_v3 = vmul.f32 %v368_v1, %v11_v0  ;;  %v81_v7 = vmul.f32 %v368_v1, %v12_v4  ;;  %v82_v8 = vmul.f32 %v368_v1, %v13_v5  ;;  %v83_v9 = vmul.f32 %v368_v1, %v14_v6  ;;  %v15_v10 = vld [vmem:[%s884_s0 + $0x20] sm:$0xff]  ;;  %v16_v11 = vld [vmem:[%s884_s0 + $0x28] sm:$0xff]  ;;  %v17_v12 = vld [vmem:[%s884_s0 + $0x30] sm:$0xff] }
   0x4   :  { %v84_v14 = vmul.f32 %v368_v1, %v15_v10  ;;  %v85_v15 = vmul.f32 %v368_v1, %v16_v11  ;;  %v86_v16 = vmul.f32 %v368_v1, %v17_v12  ;;  %v18_v17 = vld [vmem:[%s884_s0 + $0x38] sm:$0xff]  ;;  %v19_v22 = vld [vmem:[%s884_s0 + $0x40] sm:$0xff]  ;;  %v20_v27 = vld [vmem:[%s884_s0 + $0x48] sm:$0xff] }
   0x5   :  { %v149_v13 = vadd.f32 %v373_v2, %v80_v3  ;;  %v150_v18 = vadd.f32 %v373_v2, %v81_v7  ;;  %v151_v19 = vadd.f32 %v373_v2, %v82_v8  ;;  %v152_v20 = vadd.f32 %v373_v2, %v83_v9  ;;  %v21_v28 = vld [vmem:[%s884_s0 + $0x50] sm:$0xff]  ;;  %v22_v29 = vld [vmem:[%s884_s0 + $0x58] sm:$0xff]  ;;  %v23_v34 = vld [vmem:[%s884_s0 + $0x60] sm:$0xff] }
   0x6   :  { %v87_v21 = vmul.f32 %v368_v1, %v18_v17  ;;  %v153_v24 = vadd.f32 %v373_v2, %v84_v14  ;;  %v154_v25 = vadd.f32 %v373_v2, %v85_v15  ;;  %v155_v26 = vadd.f32 %v373_v2, %v86_v16  ;;  %v24_v35 = vld [vmem:[%s884_s0 + $0x68] sm:$0xff]  ;;  %v25_v36 = vld [vmem:[%s884_s0 + $0x70] sm:$0xff]  ;;  %v26_v41 = vld [vmem:[%s884_s0 + $0x78] sm:$0xff] }
   0x7   :  { %v213_v23 = vmax.f32 %v149_v13, 0.0  ;;  %v214_v30 = vmax.f32 %v150_v18, 0.0  ;;  %v215_v31 = vmax.f32 %v151_v19, 0.0  ;;  %v216_v32 = vmax.f32 %v152_v20, 0.0  ;;  %v27_v54 = vld [vmem:[%s884_s0 + $0x80] sm:$0xff]  ;;  %v28_v59 = vld [vmem:[%s884_s0 + $0x88] sm:$0xff] }
   0x8   :  { %v156_v33 = vadd.f32 %v373_v2, %v87_v21  ;;  %v217_v37 = vmax.f32 %v153_v24, 0.0  ;;  %v218_v38 = vmax.f32 %v154_v25, 0.0  ;;  %v219_v39 = vmax.f32 %v155_v26, 0.0  ;;  %v29_v60 = vld [vmem:[%s884_s0 + $0x90] sm:$0xff]  ;;  %v30_v61 = vld [vmem:[%s884_s0 + $0x98] sm:$0xff]  ;;  %v31_v4 = vld [vmem:[%s884_s0 + $0xa0] sm:$0xff] }
   0x9   :  { %277 = vst [vmem:[%s886_s2] sm:$0xff] %v213_v23  ;;  %v88_v40 = vmul.f32 %v368_v1, %v19_v22  ;;  %278 = vst [vmem:[%s886_s2 + $0x8] sm:$0xff] %v214_v30  ;;  %v89_v43 = vmul.f32 %v368_v1, %v20_v27  ;;  %v90_v44 = vmul.f32 %v368_v1, %v21_v28  ;;  %v32_v5 = vld [vmem:[%s884_s0 + $0xa8] sm:$0xff]  ;;  %v33_v6 = vld [vmem:[%s884_s0 + $0xb0] sm:$0xff] }
   0xa   :  { %279 = vst [vmem:[%s886_s2 + $0x10] sm:$0xff] %v215_v31  ;;  %280 = vst [vmem:[%s886_s2 + $0x18] sm:$0xff] %v216_v32  ;;  %v220_v42 = vmax.f32 %v156_v33, 0.0  ;;  %v91_v45 = vmul.f32 %v368_v1, %v22_v29  ;;  %v92_v47 = vmul.f32 %v368_v1, %v23_v34  ;;  %v93_v48 = vmul.f32 %v368_v1, %v24_v35  ;;  %v34_v11 = vld [vmem:[%s884_s0 + $0xb8] sm:$0xff]  ;;  %v35_v24 = vld [vmem:[%s884_s0 + $0xc0] sm:$0xff] }
   0xb   :  { %281 = vst [vmem:[%s886_s2 + $0x20] sm:$0xff] %v217_v37  ;;  %282 = vst [vmem:[%s886_s2 + $0x28] sm:$0xff] %v218_v38  ;;  %v157_v46 = vadd.f32 %v373_v2, %v88_v40  ;;  %v94_v49 = vmul.f32 %v368_v1, %v25_v36  ;;  %v158_v50 = vadd.f32 %v373_v2, %v89_v43  ;;  %v36_v29 = vld [vmem:[%s884_s0 + $0xc8] sm:$0xff]  ;;  %v37_v30 = vld [vmem:[%s884_s0 + $0xd0] sm:$0xff] }
   0xc   :  { %283 = vst [vmem:[%s886_s2 + $0x30] sm:$0xff] %v219_v39  ;;  %284 = vst [vmem:[%s886_s2 + $0x38] sm:$0xff] %v220_v42  ;;  %v159_v51 = vadd.f32 %v373_v2, %v90_v44  ;;  %v160_v52 = vadd.f32 %v373_v2, %v91_v45  ;;  %v95_v53 = vmul.f32 %v368_v1, %v26_v41  ;;  %v38_v31 = vld [vmem:[%s884_s0 + $0xd8] sm:$0xff]  ;;  %v39_v36 = vld [vmem:[%s884_s0 + $0xe0] sm:$0xff] }
   0xd   :  { %v221_v55 = vmax.f32 %v157_v46, 0.0  ;;  %v161_v56 = vadd.f32 %v373_v2, %v92_v47  ;;  %v162_v57 = vadd.f32 %v373_v2, %v93_v48  ;;  %v163_v58 = vadd.f32 %v373_v2, %v94_v49  ;;  %v40_v37 = vld [vmem:[%s884_s0 + $0xe8] sm:$0xff]  ;;  %v41_v38 = vld [vmem:[%s884_s0 + $0xf0] sm:$0xff]  ;;  %v42_v43 = vld [vmem:[%s884_s0 + $0xf8] sm:$0xff] }
   0xe   :  { %v222_v62 = vmax.f32 %v158_v50, 0.0  ;;  %v223_v63 = vmax.f32 %v159_v51, 0.0  ;;  %v224_v0 = vmax.f32 %v160_v52, 0.0  ;;  %v164_v3 = vadd.f32 %v373_v2, %v95_v53 }
   0xf   :  { %285 = vst [vmem:[%s886_s2 + $0x40] sm:$0xff] %v221_v55  ;;  %v225_v7 = vmax.f32 %v161_v56, 0.0  ;;  %v226_v8 = vmax.f32 %v162_v57, 0.0  ;;  %v227_v9 = vmax.f32 %v163_v58, 0.0  ;;  %v96_v10 = vmul.f32 %v368_v1, %v27_v54  ;;  %v43_v56 = vld [vmem:[%s884_s0 + $0x100] sm:$0xff] }
  0x10   :  { %286 = vst [vmem:[%s886_s2 + $0x48] sm:$0xff] %v222_v62  ;;  %287 = vst [vmem:[%s886_s2 + $0x50] sm:$0xff] %v223_v63  ;;  %v228_v12 = vmax.f32 %v164_v3, 0.0  ;;  %v97_v13 = vmul.f32 %v368_v1, %v28_v59  ;;  %v98_v14 = vmul.f32 %v368_v1, %v29_v60  ;;  %v99_v15 = vmul.f32 %v368_v1, %v30_v61  ;;  %v44_v61 = vld [vmem:[%s884_s0 + $0x108] sm:$0xff]  ;;  %v45_v62 = vld [vmem:[%s884_s0 + $0x110] sm:$0xff] }
  0x11   :  { %288 = vst [vmem:[%s886_s2 + $0x58] sm:$0xff] %v224_v0  ;;  %289 = vst [vmem:[%s886_s2 + $0x60] sm:$0xff] %v225_v7  ;;  %v165_v16 = vadd.f32 %v373_v2, %v96_v10  ;;  %v100_v17 = vmul.f32 %v368_v1, %v31_v4  ;;  %v101_v18 = vmul.f32 %v368_v1, %v32_v5  ;;  %v46_v63 = vld [vmem:[%s884_s0 + $0x118] sm:$0xff]  ;;  %v48_v7 = vld [vmem:[%s884_s0 + $0x128] sm:$0xff] }
  0x12   :  { %290 = vst [vmem:[%s886_s2 + $0x68] sm:$0xff] %v226_v8  ;;  %291 = vst [vmem:[%s886_s2 + $0x70] sm:$0xff] %v227_v9  ;;  %v102_v19 = vmul.f32 %v368_v1, %v33_v6  ;;  %v166_v20 = vadd.f32 %v373_v2, %v97_v13  ;;  %v167_v21 = vadd.f32 %v373_v2, %v98_v14  ;;  %v47_v6 = vld [vmem:[%s884_s0 + $0x120] sm:$0xff]  ;;  %v49_v8 = vld [vmem:[%s884_s0 + $0x130] sm:$0xff] }
  0x13   :  { %292 = vst [vmem:[%s886_s2 + $0x78] sm:$0xff] %v228_v12  ;;  %v168_v22 = vadd.f32 %v373_v2, %v99_v15  ;;  %v103_v23 = vmul.f32 %v368_v1, %v34_v11  ;;  %v229_v25 = vmax.f32 %v165_v16, 0.0  ;;  %v169_v26 = vadd.f32 %v373_v2, %v100_v17  ;;  %v50_v13 = vld [vmem:[%s884_s0 + $0x138] sm:$0xff] }
  0x14   :  { %v170_v27 = vadd.f32 %v373_v2, %v101_v18  ;;  %v171_v28 = vadd.f32 %v373_v2, %v102_v19  ;;  %v230_v32 = vmax.f32 %v166_v20, 0.0  ;;  %v231_v33 = vmax.f32 %v167_v21, 0.0 }
  0x15   :  { %v232_v34 = vmax.f32 %v168_v22, 0.0  ;;  %v172_v35 = vadd.f32 %v373_v2, %v103_v23  ;;  %293 = vst [vmem:[%s886_s2 + $0x80] sm:$0xff] %v229_v25  ;;  %v233_v39 = vmax.f32 %v169_v26, 0.0  ;;  %v104_v42 = vmul.f32 %v368_v1, %v35_v24  ;;  %v51_v26 = vld [vmem:[%s884_s0 + $0x140] sm:$0xff] }
  0x16   :  { %v234_v40 = vmax.f32 %v170_v27, 0.0  ;;  %v235_v41 = vmax.f32 %v171_v28, 0.0  ;;  %294 = vst [vmem:[%s886_s2 + $0x88] sm:$0xff] %v230_v32  ;;  %295 = vst [vmem:[%s886_s2 + $0x90] sm:$0xff] %v231_v33  ;;  %v105_v45 = vmul.f32 %v368_v1, %v36_v29  ;;  %v106_v46 = vmul.f32 %v368_v1, %v37_v30  ;;  %v53_v32 = vld [vmem:[%s884_s0 + $0x150] sm:$0xff]  ;;  %v54_v33 = vld [vmem:[%s884_s0 + $0x158] sm:$0xff] }
  0x17   :  { %296 = vst [vmem:[%s886_s2 + $0x98] sm:$0xff] %v232_v34  ;;  %v236_v44 = vmax.f32 %v172_v35, 0.0  ;;  %v107_v47 = vmul.f32 %v368_v1, %v38_v31  ;;  %297 = vst [vmem:[%s886_s2 + $0xa0] sm:$0xff] %v233_v39  ;;  %v173_v48 = vadd.f32 %v373_v2, %v104_v42  ;;  %v108_v49 = vmul.f32 %v368_v1, %v39_v36  ;;  %v52_v31 = vld [vmem:[%s884_s0 + $0x148] sm:$0xff] }
  0x18   :  { %298 = vst [vmem:[%s886_s2 + $0xa8] sm:$0xff] %v234_v40  ;;  %299 = vst [vmem:[%s886_s2 + $0xb0] sm:$0xff] %v235_v41  ;;  %v109_v50 = vmul.f32 %v368_v1, %v40_v37  ;;  %v110_v51 = vmul.f32 %v368_v1, %v41_v38  ;;  %v174_v52 = vadd.f32 %v373_v2, %v105_v45  ;;  %v55_v38 = vld [vmem:[%s884_s0 + $0x160] sm:$0xff]  ;;  %v56_v39 = vld [vmem:[%s884_s0 + $0x168] sm:$0xff] }
  0x19   :  { %300 = vst [vmem:[%s886_s2 + $0xb8] sm:$0xff] %v236_v44  ;;  %v175_v53 = vadd.f32 %v373_v2, %v106_v46  ;;  %v176_v54 = vadd.f32 %v373_v2, %v107_v47  ;;  %v111_v55 = vmul.f32 %v368_v1, %v42_v43  ;;  %v237_v57 = vmax.f32 %v173_v48, 0.0  ;;  %v57_v40 = vld [vmem:[%s884_s0 + $0x170] sm:$0xff]  ;;  %v58_v45 = vld [vmem:[%s884_s0 + $0x178] sm:$0xff] }
  0x1a   :  { %v177_v58 = vadd.f32 %v373_v2, %v108_v49  ;;  %v178_v59 = vadd.f32 %v373_v2, %v109_v50  ;;  %v179_v60 = vadd.f32 %v373_v2, %v110_v51  ;;  %v238_v0 = vmax.f32 %v174_v52, 0.0 }
  0x1b   :  { %v239_v3 = vmax.f32 %v175_v53, 0.0  ;;  %v240_v4 = vmax.f32 %v176_v54, 0.0  ;;  %v180_v5 = vadd.f32 %v373_v2, %v111_v55  ;;  %301 = vst [vmem:[%s886_s2 + $0xc0] sm:$0xff] %v237_v57  ;;  %v112_v12 = vmul.f32 %v368_v1, %v43_v56 }
  0x1c   :  { %v241_v9 = vmax.f32 %v177_v58, 0.0  ;;  %v242_v10 = vmax.f32 %v178_v59, 0.0  ;;  %v243_v11 = vmax.f32 %v179_v60, 0.0  ;;  %302 = vst [vmem:[%s886_s2 + $0xc8] sm:$0xff] %v238_v0  ;;  %v113_v15 = vmul.f32 %v368_v1, %v44_v61  ;;  %v59_v58 = vld [vmem:[%s884_s0 + $0x180] sm:$0xff]  ;;  %v61_v0 = vld [vmem:[%s884_s0 + $0x190] sm:$0xff] }
  0x1d   :  { %303 = vst [vmem:[%s886_s2 + $0xd0] sm:$0xff] %v239_v3  ;;  %304 = vst [vmem:[%s886_s2 + $0xd8] sm:$0xff] %v240_v4  ;;  %v244_v14 = vmax.f32 %v180_v5, 0.0  ;;  %v114_v16 = vmul.f32 %v368_v1, %v45_v62  ;;  %v115_v17 = vmul.f32 %v368_v1, %v46_v63  ;;  %v181_v18 = vadd.f32 %v373_v2, %v112_v12  ;;  %v60_v63 = vld [vmem:[%s884_s0 + $0x188] sm:$0xff]  ;;  %v62_v3 = vld [vmem:[%s884_s0 + $0x198] sm:$0xff] }
  0x1e   :  { %305 = vst [vmem:[%s886_s2 + $0xe0] sm:$0xff] %v241_v9  ;;  %306 = vst [vmem:[%s886_s2 + $0xe8] sm:$0xff] %v242_v10  ;;  %v116_v19 = vmul.f32 %v368_v1, %v47_v6  ;;  %v117_v20 = vmul.f32 %v368_v1, %v48_v7  ;;  %v118_v21 = vmul.f32 %v368_v1, %v49_v8  ;;  %v63_v8 = vld [vmem:[%s884_s0 + $0x1a0] sm:$0xff]  ;;  %v64_v9 = vld [vmem:[%s884_s0 + $0x1a8] sm:$0xff] }
  0x1f   :  { %307 = vst [vmem:[%s886_s2 + $0xf0] sm:$0xff] %v243_v11  ;;  %308 = vst [vmem:[%s886_s2 + $0xf8] sm:$0xff] %v244_v14  ;;  %v182_v22 = vadd.f32 %v373_v2, %v113_v15  ;;  %v183_v23 = vadd.f32 %v373_v2, %v114_v16  ;;  %v184_v24 = vadd.f32 %v373_v2, %v115_v17  ;;  %v245_v27 = vmax.f32 %v181_v18, 0.0  ;;  %v65_v10 = vld [vmem:[%s884_s0 + $0x1b0] sm:$0xff]  ;;  %v66_v15 = vld [vmem:[%s884_s0 + $0x1b8] sm:$0xff] }
  0x20   :  { %v119_v25 = vmul.f32 %v368_v1, %v50_v13  ;;  %v185_v28 = vadd.f32 %v373_v2, %v116_v19  ;;  %v186_v29 = vadd.f32 %v373_v2, %v117_v20  ;;  %v187_v30 = vadd.f32 %v373_v2, %v118_v21 }
  0x21   :  { %v246_v34 = vmax.f32 %v182_v22, 0.0  ;;  %v247_v35 = vmax.f32 %v183_v23, 0.0  ;;  %v248_v36 = vmax.f32 %v184_v24, 0.0  ;;  %309 = vst [vmem:[%s886_s2 + $0x100] sm:$0xff] %v245_v27  ;;  %v120_v44 = vmul.f32 %v368_v1, %v51_v26 }
  0x22   :  { %v188_v37 = vadd.f32 %v373_v2, %v119_v25  ;;  %v249_v41 = vmax.f32 %v185_v28, 0.0  ;;  %v250_v42 = vmax.f32 %v186_v29, 0.0  ;;  %v251_v43 = vmax.f32 %v187_v30, 0.0  ;;  %v67_v28 = vld [vmem:[%s884_s0 + $0x1c0] sm:$0xff] }
  0x23   :  { %310 = vst [vmem:[%s886_s2 + $0x108] sm:$0xff] %v246_v34  ;;  %311 = vst [vmem:[%s886_s2 + $0x110] sm:$0xff] %v247_v35  ;;  %v121_v47 = vmul.f32 %v368_v1, %v52_v31  ;;  %v122_v48 = vmul.f32 %v368_v1, %v53_v32  ;;  %v123_v49 = vmul.f32 %v368_v1, %v54_v33  ;;  %v68_v33 = vld [vmem:[%s884_s0 + $0x1c8] sm:$0xff]  ;;  %v69_v34 = vld [vmem:[%s884_s0 + $0x1d0] sm:$0xff] }
  0x24   :  { %312 = vst [vmem:[%s886_s2 + $0x118] sm:$0xff] %v248_v36  ;;  %v252_v46 = vmax.f32 %v188_v37, 0.0  ;;  %313 = vst [vmem:[%s886_s2 + $0x120] sm:$0xff] %v249_v41  ;;  %v189_v50 = vadd.f32 %v373_v2, %v120_v44  ;;  %v124_v51 = vmul.f32 %v368_v1, %v55_v38  ;;  %v125_v52 = vmul.f32 %v368_v1, %v56_v39  ;;  %v70_v35 = vld [vmem:[%s884_s0 + $0x1d8] sm:$0xff]  ;;  %v72_v41 = vld [vmem:[%s884_s0 + $0x1e8] sm:$0xff] }
  0x25   :  { %314 = vst [vmem:[%s886_s2 + $0x128] sm:$0xff] %v250_v42  ;;  %315 = vst [vmem:[%s886_s2 + $0x130] sm:$0xff] %v251_v43  ;;  %v126_v53 = vmul.f32 %v368_v1, %v57_v40  ;;  %v190_v54 = vadd.f32 %v373_v2, %v121_v47  ;;  %v191_v55 = vadd.f32 %v373_v2, %v122_v48  ;;  %v71_v40 = vld [vmem:[%s884_s0 + $0x1e0] sm:$0xff]  ;;  %v73_v42 = vld [vmem:[%s884_s0 + $0x1f0] sm:$0xff] }
  0x26   :  { %316 = vst [vmem:[%s886_s2 + $0x138] sm:$0xff] %v252_v46  ;;  %v192_v56 = vadd.f32 %v373_v2, %v123_v49  ;;  %v127_v57 = vmul.f32 %v368_v1, %v58_v45  ;;  %v253_v59 = vmax.f32 %v189_v50, 0.0  ;;  %v193_v60 = vadd.f32 %v373_v2, %v124_v51  ;;  %v74_v47 = vld [vmem:[%s884_s0 + $0x1f8] sm:$0xff] }
  0x27   :  { %v194_v61 = vadd.f32 %v373_v2, %v125_v52  ;;  %v195_v62 = vadd.f32 %v373_v2, %v126_v53  ;;  %v254_v4 = vmax.f32 %v190_v54, 0.0  ;;  %v255_v5 = vmax.f32 %v191_v55, 0.0 }
  0x28   :  { %v256_v6 = vmax.f32 %v192_v56, 0.0  ;;  %v196_v7 = vadd.f32 %v373_v2, %v127_v57  ;;  %317 = vst [vmem:[%s886_s2 + $0x140] sm:$0xff] %v253_v59  ;;  %v257_v11 = vmax.f32 %v193_v60, 0.0  ;;  %v128_v14 = vmul.f32 %v368_v1, %v59_v58 }
  0x29   :  { %v258_v12 = vmax.f32 %v194_v61, 0.0  ;;  %v259_v13 = vmax.f32 %v195_v62, 0.0  ;;  %318 = vst [vmem:[%s886_s2 + $0x148] sm:$0xff] %v254_v4  ;;  %319 = vst [vmem:[%s886_s2 + $0x150] sm:$0xff] %v255_v5  ;;  %v129_v17 = vmul.f32 %v368_v1, %v60_v63  ;;  %v130_v18 = vmul.f32 %v368_v1, %v61_v0 }
  0x2a   :  { %320 = vst [vmem:[%s886_s2 + $0x158] sm:$0xff] %v256_v6  ;;  %v260_v16 = vmax.f32 %v196_v7, 0.0  ;;  %v131_v19 = vmul.f32 %v368_v1, %v62_v3  ;;  %321 = vst [vmem:[%s886_s2 + $0x160] sm:$0xff] %v257_v11  ;;  %v197_v20 = vadd.f32 %v373_v2, %v128_v14  ;;  %v132_v21 = vmul.f32 %v368_v1, %v63_v8 }
  0x2b   :  { %322 = vst [vmem:[%s886_s2 + $0x168] sm:$0xff] %v258_v12  ;;  %323 = vst [vmem:[%s886_s2 + $0x170] sm:$0xff] %v259_v13  ;;  %v133_v22 = vmul.f32 %v368_v1, %v64_v9  ;;  %v134_v23 = vmul.f32 %v368_v1, %v65_v10  ;;  %v198_v24 = vadd.f32 %v373_v2, %v129_v17 }
  0x2c   :  { %324 = vst [vmem:[%s886_s2 + $0x178] sm:$0xff] %v260_v16  ;;  %v199_v25 = vadd.f32 %v373_v2, %v130_v18  ;;  %v200_v26 = vadd.f32 %v373_v2, %v131_v19  ;;  %v135_v27 = vmul.f32 %v368_v1, %v66_v15  ;;  %v261_v29 = vmax.f32 %v197_v20, 0.0 }
  0x2d   :  { %v201_v30 = vadd.f32 %v373_v2, %v132_v21  ;;  %v202_v31 = vadd.f32 %v373_v2, %v133_v22  ;;  %v203_v32 = vadd.f32 %v373_v2, %v134_v23  ;;  %v262_v36 = vmax.f32 %v198_v24, 0.0 }
  0x2e   :  { %v263_v37 = vmax.f32 %v199_v25, 0.0  ;;  %v264_v38 = vmax.f32 %v200_v26, 0.0  ;;  %v204_v39 = vadd.f32 %v373_v2, %v135_v27  ;;  %325 = vst [vmem:[%s886_s2 + $0x180] sm:$0xff] %v261_v29  ;;  %v136_v46 = vmul.f32 %v368_v1, %v67_v28 }
  0x2f   :  { %v265_v43 = vmax.f32 %v201_v30, 0.0  ;;  %v266_v44 = vmax.f32 %v202_v31, 0.0  ;;  %v267_v45 = vmax.f32 %v203_v32, 0.0  ;;  %326 = vst [vmem:[%s886_s2 + $0x188] sm:$0xff] %v262_v36  ;;  %v137_v49 = vmul.f32 %v368_v1, %v68_v33 }
  0x30   :  { %327 = vst [vmem:[%s886_s2 + $0x190] sm:$0xff] %v263_v37  ;;  %328 = vst [vmem:[%s886_s2 + $0x198] sm:$0xff] %v264_v38  ;;  %v268_v48 = vmax.f32 %v204_v39, 0.0  ;;  %v138_v50 = vmul.f32 %v368_v1, %v69_v34  ;;  %v139_v51 = vmul.f32 %v368_v1, %v70_v35  ;;  %v205_v52 = vadd.f32 %v373_v2, %v136_v46 }
  0x31   :  { %329 = vst [vmem:[%s886_s2 + $0x1a0] sm:$0xff] %v265_v43  ;;  %330 = vst [vmem:[%s886_s2 + $0x1a8] sm:$0xff] %v266_v44  ;;  %v140_v53 = vmul.f32 %v368_v1, %v71_v40  ;;  %v141_v54 = vmul.f32 %v368_v1, %v72_v41  ;;  %v142_v55 = vmul.f32 %v368_v1, %v73_v42 }
  0x32   :  { %331 = vst [vmem:[%s886_s2 + $0x1b0] sm:$0xff] %v267_v45  ;;  %332 = vst [vmem:[%s886_s2 + $0x1b8] sm:$0xff] %v268_v48  ;;  %v206_v56 = vadd.f32 %v373_v2, %v137_v49  ;;  %v207_v57 = vadd.f32 %v373_v2, %v138_v50  ;;  %v208_v58 = vadd.f32 %v373_v2, %v139_v51  ;;  %v269_v60 = vmax.f32 %v205_v52, 0.0 }
  0x33   :  { %v143_v59 = vmul.f32 %v368_v1, %v74_v47  ;;  %v209_v61 = vadd.f32 %v373_v2, %v140_v53  ;;  %v210_v62 = vadd.f32 %v373_v2, %v141_v54  ;;  %v211_v63 = vadd.f32 %v373_v2, %v142_v55 }
  0x34   :  { %v270_v0 = vmax.f32 %v206_v56, 0.0  ;;  %v271_v3 = vmax.f32 %v207_v57, 0.0  ;;  %v272_v4 = vmax.f32 %v208_v58, 0.0  ;;  %333 = vst [vmem:[%s886_s2 + $0x1c0] sm:$0xff] %v269_v60 }
  0x35   :  { %v212_v5 = vadd.f32 %v373_v2, %v143_v59  ;;  %v273_v6 = vmax.f32 %v209_v61, 0.0  ;;  %v274_v7 = vmax.f32 %v210_v62, 0.0  ;;  %v275_v8 = vmax.f32 %v211_v63, 0.0 }
  0x36   :  { %334 = vst [vmem:[%s886_s2 + $0x1c8] sm:$0xff] %v270_v0  ;;  %335 = vst [vmem:[%s886_s2 + $0x1d0] sm:$0xff] %v271_v3 }
  0x37   :  { %336 = vst [vmem:[%s886_s2 + $0x1d8] sm:$0xff] %v272_v4  ;;  %v276_v1 = vmax.f32 %v212_v5, 0.0  ;;  %337 = vst [vmem:[%s886_s2 + $0x1e0] sm:$0xff] %v273_v6 }
  0x38   :  { %338 = vst [vmem:[%s886_s2 + $0x1e8] sm:$0xff] %v274_v7  ;;  %339 = vst [vmem:[%s886_s2 + $0x1f0] sm:$0xff] %v275_v8 }
  0x39   :  { %340 = vst [vmem:[%s886_s2 + $0x1f8] sm:$0xff] %v276_v1 }

// kernel: double_conv_forward.3
= control target key start
LH: loop header
LB: loop body
LE: loop exit
PB: predicated region body
PF: predicated region fallthrough
CT: control target
= control target key end

     0   :  { %s2394_s18 = smov 0   ;;  %s2396_s19 = smov 0   ;;  %s2767_s0 = inlined_call_operand.vmem [shape: f32[2,18,18,3], index: 0, kind: input, shape index: {}, may-alias: {0,1,2}]   ;;  %s2768_s1 = inlined_call_operand.vmem [shape: f32[2,18,18,3], index: 1, kind: input, shape index: {}, may-alias: {0,1,2}]   ;;  %s2769_s2 = inlined_call_operand.vmem [shape: f32[2,18,18,3], index: 2, kind: input, shape index: {}, may-alias: {0,1,2}]   ;;  %s2770_s3 = inlined_call_operand.vmem [shape: f32[9,3,128], index: 3, kind: input, shape index: {}]   ;;  %s2771_s4 = inlined_call_operand.vmem [shape: f32[2,16,16,128], index: 4, kind: output, shape index: {0}]   ;;  %s2772_s5 = inlined_call_operand.vmem [shape: f32[2,4,2,128], index: 5, kind: output, shape index: {1}]  }
   0x1   :  { %s2398_s20 = smov 0   ;;  %s2400_s21 = smov 0  }
   0x2   :  { %s2402_s22 = smov 0  }
   0x3 LB: > { %s31_s23 = sadd.s32 1, %s2354_s20  ;;  %s35_s24 = sadd.s32 1, %s2358_s21  ;;  %s2362_s22 = sphi %s2402_s22, %s16_s22   ;;  %s2358_s21 = sphi %s2400_s21, %s2776_s21   ;;  %s2354_s20 = sphi %s2398_s20, %s2775_s20   ;;  %s2350_s19 = sphi %s2396_s19, %s2774_s19   ;;  %s2346_s18 = sphi %s2394_s18, %s2773_s18  }
   0x4   : > { %p33_p0 = scmp.ge.s32.totalorder %s31_s23, 4  ;;  %p1955_p1 = scmp.ge.s32.totalorder %s2362_s22, 1 }
   0x5   : > { %p296_p2 = scmp.lt.s32.totalorder %s2362_s22, 9 }
   0x6   : > { %s2778_s23 = smov (%p33_p0, %s31_s23), 0  ;;  %s2780_s24 = smov (!%p33_p0, %s35_s24), %s2358_s21 }
   0x7   : > { %p297_p3 = pnand %p1955_p1, %p296_p2  ;;  %p37_p4 = scmp.ge.s32.totalorder %s2780_s24, 2 }
   0x8   : > { %s2430_s27 = sshll.u32 (!%p297_p3), %s2346_s18, 2  ;;  %p386_p5 = scmp.lt.s32.totalorder (!%p297_p3), %s2350_s19, 1 }
   0x9   : > { %s2782_s24 = smov (%p37_p4, %s2780_s24), 0  ;;  %300 = sbr.rel (%p297_p3) target bundleno = 315 (0x13b), region = 36 }
   0xa   : > { %p388_p6 = scmp.lt.s32.totalorder (!%p297_p3), %s2430_s27, 17  ;;  %s2469_s15 = sadd.s32 (!%p297_p3), 4, %s2430_s27 }
   0xb   : > { %p405_p7 = scmp.lt.s32.totalorder (!%p297_p3), %s2469_s15, 17  ;;  %s416_s16 = sadd.s32 (!%p297_p3), 1, %s2469_s15 }
   0xc   : > { %p419_p8 = scmp.lt.s32.totalorder (!%p297_p3), %s416_s16, 17  ;;  %p436_p9 = scmp.lt.s32.totalorder (!%p297_p3), %s2430_s27, 15 }
   0xd   : > { %p449_p10 = scmp.lt.s32.totalorder (!%p297_p3), %s2346_s18, 3 }
   0xe   : > { %v1968_v0 = vld [vmem:[%s2770_s3 + $0x4] sm:$0x7]  ;;  %vm529_vm0 = vcmask 1042432   ;;  %v476_v1 = vld [vmem:[%s2770_s3] sm:$0x7]  ;;  %s2784_s19 = smov (!%p386_p5, %s2350_s19), 1 }
   0xf   : > { %2278 = vmatprep.subr.msk.mxu1 %vm529_vm0, %v1968_v0  ;;  %2152 = vmatprep.subr.msk.mxu0 %vm529_vm0, %v1968_v0  ;;  %v1987_v2 = vld [vmem:[%s2770_s3 + $0x8] sm:$0x7]  ;;  %s389_s7 = scalar_select %p388_p6, %s2430_s27, 17  ;;  %vm489_vm1 = vcmask 1046528   ;;  %vm512_vm2 = vcmask 23552   ;;  %vm762_vm3 = vcmask 1045504  }
  0x10   : > { %2279 = vmatpush3.msk.msra.mxu1 %vm529_vm0, %v1968_v0  ;;  %2153 = vmatpush3.msk.msra.mxu0 %vm529_vm0, %v1968_v0  ;;  %s2449_s8 = smul.u32 54, %s2784_s19  ;;  %v1997_v32 = vld [vmem:[%s2770_s3 + $0xc] sm:$0x7]  ;;  %v2007_v36 = vld [vmem:[%s2770_s3 + $0x10] sm:$0x7]  ;;  %s2786_s16 = smov (!%p419_p8, %s416_s16), 17 }
  0x11   : > { %2166 = vmatprep.subr.msk.mxu1 %vm529_vm0, %v476_v1  ;;  %2180 = vmatprep.subr.msk.mxu0 %vm529_vm0, %v1987_v2  ;;  %s2280_s9 = smul.u32 3, %s389_s7  ;;  %v2017_v48 = vld [vmem:[%s2770_s3 + $0x14] sm:$0x7]  ;;  %v2027_v51 = vld [vmem:[%s2770_s3 + $0x18] sm:$0x7]  ;;  %s2788_s27 = smov (!%p436_p9, %s2430_s27), 15 }
  0x12   : > { %s406_s28 = scalar_select %p405_p7, %s2469_s15, 17  ;;  %v2037_v61 = vld [vmem:[%s2770_s3 + $0x1c] sm:$0x7]  ;;  %v2047_v62 = vld [vmem:[%s2770_s3 + $0x20] sm:$0x7]  ;;  %vm1717_vm4 = vcmask 1040384  }
  0x13   : > { %s392_s10 = sadd.s32 %s2449_s8, %s2280_s9  ;;  %s2283_s15 = smul.u32 3, %s2786_s16 }
  0x14   : > { %s1957_s11 = sshll.u32 %s392_s10, 3  ;;  %s2282_s9 = smul.u32 3, %s406_s28 }
  0x15   : > { %s394_s14 = scalar_lea.vmem %s2767_s0, %s1957_s11  ;;  %s423_s29 = sadd.s32 %s2283_s15, %s2449_s8 }
  0x16   : > { %v458_v3 = vld [vmem:[%s394_s14] sm:$0xff]  ;;  %v2455_v4 = vld [vmem:[%s394_s14 + $0x8] sm:$0xff]  ;;  %v2457_v5 = vld [vmem:[%s394_s14 + $0x30] sm:$0xff]  ;;  %s409_s10 = sadd.s32 %s2282_s9, %s2449_s8  ;;  %s1961_s30 = sshll.u32 %s423_s29, 3 }
  0x17   : > { %v490_v6 = vrot.slane %v458_v3, 1  ;;  %v491_v7 = vrot.slane %v2455_v4, 1  ;;  %v2460_v8 = vld [vmem:[%s394_s14 + $0x38] sm:$0xff]  ;;  %v500_v9 = vrot.slane %v2457_v5, 1  ;;  %v460_v10 = vld [vmem:[%s394_s14 + $0x10] sm:$0x3]  ;;  %s425_s7 = scalar_lea.vmem %s2769_s2, %s1961_s30 }
  0x18   : > { %v501_v11 = vrot.slane %v2460_v8, 1  ;;  %v493_v12 = vrot.slane %v460_v10, 1  ;;  %v2464_v13 = vld [vmem:[%s394_s14 + $0x40] sm:$0x3]  ;;  %v2466_v14 = vld [vmem:[%s394_s14 + $0x18] sm:$0xff]  ;;  %v2476_v19 = vld [vmem:[%s394_s14 + $0x48] sm:$0xff] }
  0x19   : > { %v492_v15 = vsel %vm489_vm1, %v490_v6, %v491_v7  ;;  %v503_v16 = vrot.slane %v2464_v13, 1  ;;  %v2473_v17 = vld [vmem:[%s394_s14 + $0x20] sm:$0xff]  ;;  %v495_v18 = vrot.slane %v2466_v14, 1  ;;  %v2478_v20 = vld [vmem:[%s394_s14 + $0x50] sm:$0xff]  ;;  %v763_v21 = vrot.slane %v458_v3, 2  ;;  %s1959_s11 = sshll.u32 %s409_s10, 3 }
  0x1a   : > { %2154 = vmatprep.mubr.msk.f32.mxu0 %vm512_vm2, %v492_v15  ;;  %v2482_v22 = vsel %vm489_vm1, %v500_v9, %v501_v11  ;;  %v494_v23 = vsel %vm489_vm1, %v491_v7, %v493_v12  ;;  %v496_v24 = vrot.slane %v2473_v17, 1  ;;  %v505_v25 = vrot.slane %v2476_v19, 1  ;;  %v463_v26 = vld [vmem:[%s394_s14 + $0x28] sm:$0x3]  ;;  %v2487_v27 = vld [vmem:[%s394_s14 + $0x58] sm:$0x3]  ;;  %s411_s14 = scalar_lea.vmem %s2768_s1, %s1959_s11 }
  0x1b   : > { %2160 = vmatprep.mubr.msk.f32.mxu1 %vm512_vm2, %v2482_v22  ;;  %2155 = vmatmul.mubr.msk.f32.vlgmr.msra.gmra.mxu0 %vm512_vm2, %v494_v23  ;;  %v2493_v28 = vsel %vm489_vm1, %v501_v11, %v503_v16  ;;  %v506_v29 = vrot.slane %v2478_v20, 1  ;;  %v498_v30 = vrot.slane %v463_v26, 1  ;;  %v508_v31 = vrot.slane %v2487_v27, 1  ;;  %v470_v59 = vld [vmem:[%s411_s14] sm:$0xff]  ;;  %v471_v60 = vld [vmem:[%s411_s14 + $0x8] sm:$0xff]  ;;  %s1963_s9 = sshll.u32 %s2788_s27, 1 }
  0x1c   : > { %v766_v33 = vrot.slane %v460_v10, 2  ;;  %2161 = vmatmul.mubr.msk.f32.vlgmr.msra.gmra.mxu1 %vm512_vm2, %v2493_v28  ;;  %2181 = vmatpush3.msk.msra.mxu0 %vm529_vm0, %v1987_v2  ;;  %v497_v34 = vsel %vm489_vm1, %v495_v18, %v496_v24  ;;  %v764_v35 = vrot.slane %v2455_v4, 2  ;;  %v768_v41 = vrot.slane %v2466_v14, 2  ;;  %v472_v63 = vld [vmem:[%s411_s14 + $0x10] sm:$0x3]  ;;  %v473_v7 = vld [vmem:[%s425_s7] sm:$0xff] }
  0x1d   : > { %2167 = vmatpush3.msk.msra.mxu1 %vm529_vm0, %v476_v1  ;;  %2157 = vmatprep.mubr.msk.f32.mxu0 %vm512_vm2, %v497_v34  ;;  %v2511_v37 = vsel %vm489_vm1, %v505_v25, %v506_v29  ;;  %v499_v38 = vsel %vm489_vm1, %v496_v24, %v498_v30  ;;  %v2515_v39 = vsel %vm489_vm1, %v506_v29, %v508_v31  ;;  %v769_v42 = vrot.slane %v2473_v17, 2  ;;  %v474_v10 = vld [vmem:[%s425_s7 + $0x8] sm:$0xff]  ;;  %v475_v12 = vld [vmem:[%s425_s7 + $0x10] sm:$0x3]  ;;  %s1964_s10 = sshll.u32 %s2784_s19, 5  ;;  %s2790_s18 = smov (!%p449_p10, %s2346_s18), 3 }
  0x1e   : > { %2163 = vmatprep.mubr.msk.f32.mxu1 %vm512_vm2, %v2511_v37  ;;  %v765_v40 = vsel %vm762_vm3, %v763_v21, %v764_v35  ;;  %2194 = vmatprep.subr.msk.mxu1 %vm529_vm0, %v1997_v32  ;;  %v767_v43 = vsel %vm762_vm3, %v764_v35, %v766_v33  ;;  %v771_v44 = vrot.slane %v463_v26, 2  ;;  %v773_v45 = vrot.slane %v2457_v5, 2  ;;  %s443_s11 = sadd.s32 %s1964_s10, %s1963_s9  ;;  %s1966_s16 = sshll.u32 %s2784_s19, 2 }
  0x1f   : > { %2158 = vmatmul.mubr.msk.f32.gmra.mxu0 %vm512_vm2, %v499_v38  ;;  %2208 = vmatprep.subr.msk.mxu0 %vm529_vm0, %v2007_v36  ;;  %v774_v46 = vrot.slane %v2460_v8, 2  ;;  %v2538_v47 = vsel %vm762_vm3, %v768_v41, %v769_v42  ;;  %v776_v50 = vrot.slane %v2464_v13, 2  ;;  %v778_v53 = vrot.slane %v2476_v19, 2  ;;  %s1965_s27 = sshll.u32 %s443_s11, 3  ;;  %s455_s17 = sadd.s32 %s1966_s16, %s2790_s18 }
  0x20   : > { %2164 = vmatmul.mubr.msk.f32.gmra.mxu1 %vm512_vm2, %v2515_v39  ;;  %2182 = vmatprep.mubr.msk.f32.mxu0 %vm512_vm2, %v765_v40  ;;  %v2547_v49 = vsel %vm762_vm3, %v769_v42, %v771_v44  ;;  %v779_v54 = vrot.slane %v2478_v20, 2  ;;  %v781_v56 = vrot.slane %v2487_v27, 2  ;;  %v1042_v0 = vrot.slane %v470_v59, 1  ;;  %s2732_s14 = scalar_lea.vmem %s2771_s4, %s1965_s27  ;;  %s1967_s25 = sshll.u32 %s455_s17, 1 }
  0x21   : > { %2168 = vmatprep.mubr.msk.f32.mxu1 %vm512_vm2, %v458_v3  ;;  %v2557_v52 = vsel %vm762_vm3, %v773_v45, %v774_v46  ;;  %v2572_v55 = vsel %vm762_vm3, %v774_v46, %v776_v50  ;;  %v1043_v1 = vrot.slane %v471_v60, 1  ;;  %v1045_v2 = vrot.slane %v472_v63, 1  ;;  %s457_s15 = scalar_lea.vmem %s2772_s5, %s1967_s25 }
  0x22   : > { %v2578_v57 = vsel %vm762_vm3, %v778_v53, %v779_v54  ;;  %v2588_v58 = vsel %vm762_vm3, %v779_v54, %v781_v56  ;;  %v1169_v6 = vrot.slane %v470_v59, 2  ;;  %v1548_v13 = vrot.slane %v473_v7, 2 }
  0x23   : > { %2183 = vmatmul.mubr.msk.f32.vlgmr.msra.gmra.mxu0 %vm512_vm2, %v767_v43  ;;  %v1044_v3 = vsel %vm489_vm1, %v1042_v0, %v1043_v1  ;;  %v1421_v15 = vrot.slane %v473_v7, 1  ;;  %v1422_v16 = vrot.slane %v474_v10, 1 }
  0x24   : > { %2169 = vmatmul.mubr.msk.f32.vlgmr.msra.gmra.mxu1 %vm512_vm2, %v2455_v4  ;;  %2209 = vmatpush3.msk.msra.mxu0 %vm529_vm0, %v2007_v36  ;;  %v1046_v4 = vsel %vm489_vm1, %v1043_v1, %v1045_v2 }
  0x25   : > { %2195 = vmatpush3.msk.msra.mxu1 %vm529_vm0, %v1997_v32  ;;  %2171 = vmatprep.mubr.msk.f32.mxu1 %vm512_vm2, %v2466_v14 }
  0x26   : > { %2185 = vmatprep.mubr.msk.f32.mxu0 %vm512_vm2, %v2538_v47  ;;  %2222 = vmatprep.subr.msk.mxu1 %vm529_vm0, %v2017_v48 }
  0x27   : > { %2186 = vmatmul.mubr.msk.f32.gmra.mxu0 %vm512_vm2, %v2547_v49  ;;  %2236 = vmatprep.subr.msk.mxu0 %vm529_vm0, %v2027_v51 }
  0x28   : > { %2172 = vmatmul.mubr.msk.f32.gmra.mxu1 %vm512_vm2, %v2473_v17  ;;  %2188 = vmatprep.mubr.msk.f32.mxu0 %vm512_vm2, %v2557_v52 }
  0x29   : > { %2174 = vmatprep.mubr.msk.f32.mxu1 %vm512_vm2, %v2457_v5 }
  0x2b   : > { %2189 = vmatmul.mubr.msk.f32.gmra.mxu0 %vm512_vm2, %v2572_v55 }
  0x2c   : > { %2175 = vmatmul.mubr.msk.f32.gmra.mxu1 %vm512_vm2, %v2460_v8  ;;  %2191 = vmatprep.mubr.msk.f32.mxu0 %vm512_vm2, %v2578_v57 }
  0x2d   : > { %2177 = vmatprep.mubr.msk.f32.mxu1 %vm512_vm2, %v2476_v19 }
  0x2f   : > { %2192 = vmatmul.mubr.msk.f32.gmra.mxu0 %vm512_vm2, %v2588_v58 }
  0x30   : > { %2178 = vmatmul.mubr.msk.f32.gmra.mxu1 %vm512_vm2, %v2478_v20  ;;  %2210 = vmatprep.mubr.msk.f32.mxu0 %vm512_vm2, %v497_v34 }
  0x31   : > { %2196 = vmatprep.mubr.msk.f32.mxu1 %vm512_vm2, %v2466_v14  ;;  %v1549_v14 = vrot.slane %v474_v10, 2 }
  0x33   : > { %2211 = vmatmul.mubr.msk.f32.vlgmr.msra.gmra.mxu0 %vm512_vm2, %v499_v38  ;;  %v1550_v18 = vsel %vm762_vm3, %v1548_v13, %v1549_v14 }
  0x34   : > { %2197 = vmatmul.mubr.msk.f32.vlgmr.msra.gmra.mxu1 %vm512_vm2, %v2473_v17  ;;  %2237 = vmatpush3.msk.msra.mxu0 %vm529_vm0, %v2027_v51  ;;  %v1551_v17 = vrot.slane %v475_v12, 2 }
  0x35   : > { %2223 = vmatpush3.msk.msra.mxu1 %vm529_vm0, %v2017_v48  ;;  %2199 = vmatprep.mubr.msk.f32.mxu1 %vm512_vm2, %v2457_v5 }
  0x36   : > { %2213 = vmatprep.mubr.msk.f32.mxu0 %vm512_vm2, %v2482_v22  ;;  %2250 = vmatprep.subr.msk.mxu1 %vm529_vm0, %v2037_v61  ;;  %v1552_v21 = vsel %vm762_vm3, %v1549_v14, %v1551_v17 }
  0x37   : > { %2214 = vmatmul.mubr.msk.f32.gmra.mxu0 %vm512_vm2, %v2493_v28  ;;  %2264 = vmatprep.subr.msk.mxu0 %vm529_vm0, %v2047_v62 }
  0x38   : > { %2200 = vmatmul.mubr.msk.f32.gmra.mxu1 %vm512_vm2, %v2460_v8  ;;  %2216 = vmatprep.mubr.msk.f32.mxu0 %vm512_vm2, %v2511_v37 }
  0x39   : > { %2202 = vmatprep.mubr.msk.f32.mxu1 %vm512_vm2, %v2476_v19 }
  0x3b   : > { %2217 = vmatmul.mubr.msk.f32.gmra.mxu0 %vm512_vm2, %v2515_v39 }
  0x3c   : > { %2203 = vmatmul.mubr.msk.f32.gmra.mxu1 %vm512_vm2, %v2478_v20  ;;  %2219 = vmatprep.mubr.msk.f32.mxu0 %vm512_vm2, %v1044_v3 }
  0x3d   : > { %2205 = vmatprep.mubr.msk.f32.mxu1 %vm512_vm2, %v470_v59 }
  0x3f   : > { %2220 = vmatmul.mubr.msk.f32.gmra.mxu0 %vm512_vm2, %v1046_v4 }
  0x40   : > { %2206 = vmatmul.mubr.msk.f32.gmra.mxu1 %vm512_vm2, %v471_v60  ;;  %2238 = vmatprep.mubr.msk.f32.mxu0 %vm512_vm2, %v2457_v5  ;;  %v1170_v5 = vrot.slane %v471_v60, 2 }
  0x41   : > { %2224 = vmatprep.mubr.msk.f32.mxu1 %vm512_vm2, %v2538_v47 }
  0x42   : > { %v1171_v9 = vsel %vm762_vm3, %v1169_v6, %v1170_v5 }
  0x43   : > { %2239 = vmatmul.mubr.msk.f32.vlgmr.msra.gmra.mxu0 %vm512_vm2, %v2460_v8  ;;  %v1172_v8 = vrot.slane %v472_v63, 2 }
  0x44   : > { %2225 = vmatmul.mubr.msk.f32.vlgmr.msra.gmra.mxu1 %vm512_vm2, %v2547_v49  ;;  %2265 = vmatpush3.msk.msra.mxu0 %vm529_vm0, %v2047_v62 }
  0x45   : > { %2251 = vmatpush3.msk.msra.mxu1 %vm529_vm0, %v2037_v61  ;;  %2227 = vmatprep.mubr.msk.f32.mxu1 %vm512_vm2, %v2557_v52  ;;  %v1173_v11 = vsel %vm762_vm3, %v1170_v5, %v1172_v8 }
  0x46   : > { %2241 = vmatprep.mubr.msk.f32.mxu0 %vm512_vm2, %v2476_v19  ;;  %v1424_v19 = vrot.slane %v475_v12, 1 }
  0x47   : > { %2242 = vmatmul.mubr.msk.f32.gmra.mxu0 %vm512_vm2, %v2478_v20  ;;  %v1423_v20 = vsel %vm489_vm1, %v1421_v15, %v1422_v16 }
  0x48   : > { %2228 = vmatmul.mubr.msk.f32.gmra.mxu1 %vm512_vm2, %v2572_v55  ;;  %2244 = vmatprep.mubr.msk.f32.mxu0 %vm512_vm2, %v470_v59 }
  0x49   : > { %2230 = vmatprep.mubr.msk.f32.mxu1 %vm512_vm2, %v2578_v57 }
  0x4b   : > { %2245 = vmatmul.mubr.msk.f32.gmra.mxu0 %vm512_vm2, %v471_v60 }
  0x4c   : > { %2231 = vmatmul.mubr.msk.f32.gmra.mxu1 %vm512_vm2, %v2588_v58  ;;  %2247 = vmatprep.mubr.msk.f32.mxu0 %vm512_vm2, %v473_v7 }
  0x4d   : > { %2233 = vmatprep.mubr.msk.f32.mxu1 %vm512_vm2, %v1171_v9 }
  0x4f   : > { %2248 = vmatmul.mubr.msk.f32.gmra.mxu0 %vm512_vm2, %v474_v10 }
  0x50   : > { %2234 = vmatmul.mubr.msk.f32.gmra.mxu1 %vm512_vm2, %v1173_v11  ;;  %2266 = vmatprep.mubr.msk.f32.mxu0 %vm512_vm2, %v2557_v52 }
  0x51   : > { %2252 = vmatprep.mubr.msk.f32.mxu1 %vm512_vm2, %v2482_v22  ;;  %v1425_v22 = vsel %vm489_vm1, %v1422_v16, %v1424_v19 }
  0x53   : > { %2267 = vmatmul.mubr.msk.f32.vlgmr.msra.gmra.mxu0 %vm512_vm2, %v2572_v55 }
  0x54   : > { %2253 = vmatmul.mubr.msk.f32.vlgmr.msra.gmra.mxu1 %vm512_vm2, %v2493_v28  ;;  %2269 = vmatprep.mubr.msk.f32.mxu0 %vm512_vm2, %v2578_v57 }
  0x55   : > { %2255 = vmatprep.mubr.msk.f32.mxu1 %vm512_vm2, %v2511_v37 }
  0x57   : > { %2270 = vmatmul.mubr.msk.f32.gmra.mxu0 %vm512_vm2, %v2588_v58 }
  0x58   : > { %2256 = vmatmul.mubr.msk.f32.gmra.mxu1 %vm512_vm2, %v2515_v39  ;;  %2272 = vmatprep.mubr.msk.f32.mxu0 %vm512_vm2, %v1171_v9 }
  0x59   : > { %2258 = vmatprep.mubr.msk.f32.mxu1 %vm512_vm2, %v1044_v3 }
  0x5b   : > { %2273 = vmatmul.mubr.msk.f32.gmra.mxu0 %vm512_vm2, %v1173_v11 }
  0x5c   : > { %2259 = vmatmul.mubr.msk.f32.gmra.mxu1 %vm512_vm2, %v1046_v4  ;;  %2275 = vmatprep.mubr.msk.f32.mxu0 %vm512_vm2, %v1550_v18 }
  0x5d   : > { %2261 = vmatprep.mubr.msk.f32.mxu1 %vm512_vm2, %v1423_v20 }
  0x5f   : > { %2276 = vmatmul.mubr.msk.f32.gmra.mxu0 %vm512_vm2, %v1552_v21 }
  0x60   : > { %2262 = vmatmul.mubr.msk.f32.gmra.mxu1 %vm512_vm2, %v1425_v22 }
  0xdb   : > { %v2156_v23 = vpop.f32.mrf.mxu0 }
  0xdc   : > { %v2162_v24 = vpop.f32.mrf.mxu1 }
  0xdd   : > { %v599_v25 = vpop.f32.mrf.mxu0 }
  0xde   : > { %v619_v26 = vpop.f32.mrf.mxu1 }
  0xdf   : > { %v2159_v27 = vpop.f32.mrf.mxu0 }
  0xe0   : > { %v2700_v28 = vpop.f32.mrf.mxu1 }
  0xe1   : > { %v609_v29 = vpop.f32.mrf.mxu0 }
  0xe2   : > { %v2702_v30 = vpop.f32.mrf.mxu1 }
  0xe3   : > { %v2184_v31 = vpop.f32.mrf.mxu0 }
  0xe4   : > { %v2170_v32 = vpop.f32.mrf.mxu1 }
  0xe5   : > { %v870_v33 = vpop.f32.mrf.mxu0  ;;  %v729_v63 = vadd.f32 %v2170_v32, %v2156_v23 }
  0xe6   : > { %v723_v34 = vpop.f32.mrf.mxu1 }
  0xe7   : > { %v2187_v35 = vpop.f32.mrf.mxu0  ;;  %v724_v2 = vadd.f32 %v723_v34, %v599_v25  ;;  %v910_v6 = vadd.f32 %v2184_v31, %v729_v63 }
  0xe8   : > { %v2173_v36 = vpop.f32.mrf.mxu1 }
  0xe9   : > { %v880_v37 = vpop.f32.mrf.mxu0  ;;  %v739_v5 = vadd.f32 %v2173_v36, %v2159_v27  ;;  %v909_v9 = vadd.f32 %v870_v33, %v724_v2 }
  0xea   : > { %v733_v38 = vpop.f32.mrf.mxu1 }
  0xeb   : > { %v2190_v39 = vpop.f32.mrf.mxu0  ;;  %v734_v10 = vadd.f32 %v733_v38, %v609_v29  ;;  %v912_v14 = vadd.f32 %v2187_v35, %v739_v5 }
  0xec   : > { %v2176_v40 = vpop.f32.mrf.mxu1 }
  0xed   : > { %v890_v41 = vpop.f32.mrf.mxu0  ;;  %v749_v15 = vadd.f32 %v2176_v40, %v2162_v24  ;;  %v911_v20 = vadd.f32 %v880_v37, %v734_v10 }
  0xee   : > { %v743_v42 = vpop.f32.mrf.mxu1 }
  0xef   : > { %v2704_v43 = vpop.f32.mrf.mxu0  ;;  %v744_v18 = vadd.f32 %v743_v42, %v619_v26  ;;  %v914_v27 = vadd.f32 %v2190_v39, %v749_v15 }
  0xf0   : > { %v2179_v44 = vpop.f32.mrf.mxu1 }
  0xf1   : > { %v2706_v45 = vpop.f32.mrf.mxu0  ;;  %v913_v34 = vadd.f32 %v890_v41, %v744_v18  ;;  %v759_v24 = vadd.f32 %v2179_v44, %v2700_v28 }
  0xf2   : > { %v753_v46 = vpop.f32.mrf.mxu1 }
  0xf3   : > { %v2212_v47 = vpop.f32.mrf.mxu0  ;;  %v754_v26 = vadd.f32 %v753_v46, %v2702_v30 }
  0xf4   : > { %v2198_v48 = vpop.f32.mrf.mxu1 }
  0xf5   : > { %v1122_v49 = vpop.f32.mrf.mxu0  ;;  %v1034_v11 = vadd.f32 %v2198_v48, %v910_v6  ;;  %v915_v41 = vadd.f32 %v2706_v45, %v754_v26 }
  0xf6   : > { %v994_v50 = vpop.f32.mrf.mxu1 }
  0xf7   : > { %v2215_v51 = vpop.f32.mrf.mxu0  ;;  %v1033_v16 = vadd.f32 %v994_v50, %v909_v9  ;;  %v1162_v21 = vadd.f32 %v2212_v47, %v1034_v11 }
  0xf8   : > { %v2201_v52 = vpop.f32.mrf.mxu1 }
  0xf9   : > { %v1132_v53 = vpop.f32.mrf.mxu0  ;;  %v1036_v22 = vadd.f32 %v2201_v52, %v912_v14  ;;  %v1161_v29 = vadd.f32 %v1122_v49, %v1033_v16  ;;  %v916_v52 = vadd.f32 %v2704_v43, %v759_v24 }
  0xfa   : > { %v1004_v54 = vpop.f32.mrf.mxu1 }
  0xfb   : > { %v2218_v55 = vpop.f32.mrf.mxu0  ;;  %v1035_v31 = vadd.f32 %v1004_v54, %v911_v20  ;;  %v1164_v36 = vadd.f32 %v2215_v51, %v1036_v22 }
  0xfc   : > { %v2204_v56 = vpop.f32.mrf.mxu1 }
  0xfd   : > { %v2708_v57 = vpop.f32.mrf.mxu0  ;;  %v1038_v37 = vadd.f32 %v2204_v56, %v914_v27  ;;  %v1163_v48 = vadd.f32 %v1132_v53, %v1035_v31 }
  0xfe   : > { %v1014_v58 = vpop.f32.mrf.mxu1 }
  0xff   : > { %v2710_v59 = vpop.f32.mrf.mxu0  ;;  %v1037_v42 = vadd.f32 %v1014_v58, %v913_v34  ;;  %v1166_v44 = vadd.f32 %v2218_v55, %v1038_v37 }
 0x100   : > { %v2712_v60 = vpop.f32.mrf.mxu1 }
 0x101   : > { %v2714_v61 = vpop.f32.mrf.mxu0  ;;  %v1165_v56 = vadd.f32 %v2708_v57, %v1037_v42  ;;  %v1040_v58 = vadd.f32 %v2712_v60, %v916_v52 }
 0x102   : > { %v1024_v62 = vpop.f32.mrf.mxu1 }
 0x103   : > { %v2240_v0 = vpop.f32.mrf.mxu0  ;;  %v1039_v63 = vadd.f32 %v1024_v62, %v915_v41  ;;  %v1168_v6 = vadd.f32 %v2710_v59, %v1040_v58 }
 0x104   : > { %v2226_v1 = vpop.f32.mrf.mxu1 }
 0x105   : > { %v1373_v3 = vpop.f32.mrf.mxu0  ;;  %v1289_v32 = vadd.f32 %v2226_v1, %v1162_v21  ;;  %v1167_v5 = vadd.f32 %v2714_v61, %v1039_v63 }
 0x106   : > { %v1249_v4 = vpop.f32.mrf.mxu1 }
 0x107   : > { %v2243_v7 = vpop.f32.mrf.mxu0  ;;  %v1288_v38 = vadd.f32 %v1249_v4, %v1161_v29  ;;  %v1413_v39 = vadd.f32 %v2240_v0, %v1289_v32 }
 0x108   : > { %v2229_v8 = vpop.f32.mrf.mxu1 }
 0x109   : > { %v1383_v12 = vpop.f32.mrf.mxu0  ;;  %v1291_v49 = vadd.f32 %v2229_v8, %v1164_v36  ;;  %v1412_v30 = vadd.f32 %v1373_v3, %v1288_v38 }
 0x10a   : > { %v1259_v13 = vpop.f32.mrf.mxu1 }
 0x10b   : > { %v2246_v17 = vpop.f32.mrf.mxu0  ;;  %v1290_v46 = vadd.f32 %v1259_v13, %v1163_v48  ;;  %v1415_v53 = vadd.f32 %v2243_v7, %v1291_v49 }
 0x10c   : > { %v2232_v19 = vpop.f32.mrf.mxu1 }
 0x10d   : > { %v2718_v23 = vpop.f32.mrf.mxu0  ;;  %v1293_v45 = vadd.f32 %v2232_v19, %v1166_v44  ;;  %v1414_v3 = vadd.f32 %v1383_v12, %v1290_v46 }
 0x10e   : > { %v1269_v25 = vpop.f32.mrf.mxu1 }
 0x10f   : > { %v2721_v33 = vpop.f32.mrf.mxu0  ;;  %v1292_v4 = vadd.f32 %v1269_v25, %v1165_v56  ;;  %v1417_v9 = vadd.f32 %v2246_v17, %v1293_v45 }
 0x110   : > { %v2235_v35 = vpop.f32.mrf.mxu1 }
 0x111   : > { %v1403_v40 = vpop.f32.mrf.mxu0  ;;  %v1295_v14 = vadd.f32 %v2235_v35, %v1168_v6  ;;  %v1416_v18 = vadd.f32 %v2718_v23, %v1292_v4 }
 0x112   : > { %v1279_v47 = vpop.f32.mrf.mxu1 }
 0x113   : > { %v2268_v50 = vpop.f32.mrf.mxu0  ;;  %v1294_v12 = vadd.f32 %v1279_v47, %v1167_v5  ;;  %v1419_v31 = vadd.f32 %v2721_v33, %v1295_v14 }
 0x114   : > { %v2254_v28 = vpop.f32.mrf.mxu1 }
 0x115   : > { %v1541_v54 = vadd.f32 %v2254_v28, %v1413_v39  ;;  %v1628_v51 = vpop.f32.mrf.mxu0  ;;  %v1418_v32 = vadd.f32 %v1403_v40, %v1294_v12 }
 0x116   : > { %v1501_v43 = vpop.f32.mrf.mxu1 }
 0x117   : > { %v1668_v55 = vadd.f32 %v2268_v50, %v1541_v54  ;;  %v1540_v0 = vadd.f32 %v1501_v43, %v1412_v30  ;;  %v2271_v1 = vpop.f32.mrf.mxu0 }
 0x118   : > { %v2257_v2 = vpop.f32.mrf.mxu1 }
 0x119   : > { %1676 = vst [vmem:[%s2732_s14 + $0x8] sm:$0xff] %v1668_v55  ;;  %v1667_v57 = vadd.f32 %v1628_v51, %v1540_v0  ;;  %v1543_v60 = vadd.f32 %v2257_v2, %v1415_v53  ;;  %v1638_v62 = vpop.f32.mrf.mxu0  ;;  %v1697_v15 = vmul.f32 %v1668_v55, %v1668_v55 }
 0x11a   : > { %v1511_v8 = vpop.f32.mrf.mxu1 }
 0x11b   : > { %1675 = vst [vmem:[%s2732_s14] sm:$0xff] %v1667_v57  ;;  %v1696_v7 = vmul.f32 %v1667_v57, %v1667_v57  ;;  %v1670_v10 = vadd.f32 %v2271_v1, %v1543_v60  ;;  %v1542_v11 = vadd.f32 %v1511_v8, %v1414_v3  ;;  %v2274_v13 = vpop.f32.mrf.mxu0  ;;  %v1683_v19 = vadd.f32 %v1668_v55, %v1667_v57 }
 0x11c   : > { %v2260_v16 = vpop.f32.mrf.mxu1 }
 0x11d   : > { %1678 = vst [vmem:[%s2732_s14 + $0x18] sm:$0xff] %v1670_v10  ;;  %v1669_v20 = vadd.f32 %v1638_v62, %v1542_v11  ;;  %v1545_v59 = vadd.f32 %v2260_v16, %v1417_v9  ;;  %v1648_v61 = vpop.f32.mrf.mxu0  ;;  %v1704_v21 = vadd.f32 %v1697_v15, %v1696_v7  ;;  %v1699_v23 = vmul.f32 %v1670_v10, %v1670_v10 }
 0x11e   : > { %v1521_v17 = vpop.f32.mrf.mxu1 }
 0x11f   : > { %1677 = vst [vmem:[%s2732_s14 + $0x10] sm:$0xff] %v1669_v20  ;;  %v1684_v22 = vadd.f32 %v1683_v19, %v1669_v20  ;;  %v1698_v25 = vmul.f32 %v1669_v20, %v1669_v20  ;;  %v1672_v27 = vadd.f32 %v2274_v13, %v1545_v59  ;;  %v1544_v29 = vadd.f32 %v1521_v17, %v1416_v18  ;;  %v2277_v24 = vpop.f32.mrf.mxu0 }
 0x120   : > { %v2263_v34 = vpop.f32.mrf.mxu1 }
 0x121   : > { %v1705_v26 = vadd.f32 %v1704_v21, %v1698_v25  ;;  %1680 = vst [vmem:[%s2732_s14 + $0x28] sm:$0xff] %v1672_v27  ;;  %v1671_v35 = vadd.f32 %v1648_v61, %v1544_v29  ;;  %v1685_v36 = vadd.f32 %v1684_v22, %v1670_v10  ;;  %v1547_v37 = vadd.f32 %v2263_v34, %v1419_v31  ;;  %v1658_v33 = vpop.f32.mrf.mxu0 }
 0x122   : > { %v1531_v38 = vpop.f32.mrf.mxu1  ;;  %v1701_v40 = vmul.f32 %v1672_v27, %v1672_v27 }
 0x123   : > { %1679 = vst [vmem:[%s2732_s14 + $0x20] sm:$0xff] %v1671_v35  ;;  %v1686_v42 = vadd.f32 %v1685_v36, %v1671_v35  ;;  %v1700_v47 = vmul.f32 %v1671_v35, %v1671_v35  ;;  %v1706_v48 = vadd.f32 %v1705_v26, %v1699_v23  ;;  %v1546_v39 = vadd.f32 %v1531_v38, %v1418_v32 }
 0x124   : > { %v1674_v49 = vadd.f32 %v2277_v24, %v1547_v37 }
 0x125   : > { %v1707_v50 = vadd.f32 %v1706_v48, %v1700_v47  ;;  %v1673_v52 = vadd.f32 %v1658_v33, %v1546_v39  ;;  %v1687_v41 = vadd.f32 %v1686_v42, %v1672_v27 }
 0x126   : > { %1682 = vst [vmem:[%s2732_s14 + $0x38] sm:$0xff] %v1674_v49  ;;  %v1703_v46 = vmul.f32 %v1674_v49, %v1674_v49 }
 0x127   : > { %1681 = vst [vmem:[%s2732_s14 + $0x30] sm:$0xff] %v1673_v52  ;;  %v1688_v28 = vadd.f32 %v1687_v41, %v1673_v52  ;;  %v1702_v44 = vmul.f32 %v1673_v52, %v1673_v52  ;;  %v1708_v30 = vadd.f32 %v1707_v50, %v1701_v40 }
 0x129   : > { %v1689_v54 = vadd.f32 %v1688_v28, %v1674_v49  ;;  %v1709_v51 = vadd.f32 %v1708_v30, %v1702_v44 }
 0x12b   : > { %v1690_v56 = vrot.slane %v1689_v54, 4  ;;  %v1710_v58 = vadd.f32 %v1709_v51, %v1703_v46 }
 0x12d   : > { %v1691_v63 = vadd.f32 %v1690_v56, %v1689_v54  ;;  %v1711_v43 = vrot.slane %v1710_v58, 4 }
 0x12f   : > { %v1692_v53 = vrot.slane %v1691_v63, 2  ;;  %v1712_v45 = vadd.f32 %v1711_v43, %v1710_v58 }
 0x131   : > { %v1693_v55 = vadd.f32 %v1692_v53, %v1691_v63  ;;  %v1713_v0 = vrot.slane %v1712_v45, 2 }
 0x133   : > { %v1694_v1 = vrot.slane %v1693_v55, 1  ;;  %v1714_v2 = vadd.f32 %v1713_v0, %v1712_v45 }
 0x135   : > { %v1715_v3 = vrot.slane %v1714_v2, 1  ;;  %v1695_v4 = vadd.f32 %v1694_v1, %v1693_v55 }
 0x137   : > { %v1716_v57 = vadd.f32 %v1715_v3, %v1714_v2 }
 0x139   : > { %v1718_v60 = vsel %vm1717_vm4, %v1695_v4, %v1716_v57 }
 0x13a   : > { %1719 = vst [vmem:[%s457_s15] sm:$0x3] %v1718_v60 }
 0x13b PF: > { %s16_s22 = sadd.s32 1, %s2362_s22   ;;  %s2773_s18 = smov %s2354_s20 }
 0x13c   : > { %p13_p11 = scmp.ge.s32.totalorder %s16_s22, 10   ;;  %s2774_s19 = smov %s2358_s21 }
 0x13d   : > { %s2775_s20 = smov %s2778_s23  ;;  %s2776_s21 = smov %s2782_s24 }
 0x13e   :  { %15 = sbr.rel (!%p13_p11) target bundleno = 3 (0x3), region = 95 }

// kernel: double_conv_forward.4
= control target key start
LH: loop header
LB: loop body
LE: loop exit
PB: predicated region body
PF: predicated region fallthrough
CT: control target
= control target key end

     0   :  { %s2618_s21 = smov 0   ;;  %s2620_s22 = smov 0   ;;  %s3250_s0 = inlined_call_operand.vmem [shape: f32[2,18,18,2], index: 0, kind: input, shape index: {}, may-alias: {0,1,2}]   ;;  %s3251_s1 = inlined_call_operand.vmem [shape: f32[2,18,18,2], index: 1, kind: input, shape index: {}, may-alias: {0,1,2}]   ;;  %s3252_s2 = inlined_call_operand.vmem [shape: f32[2,18,18,2], index: 2, kind: input, shape index: {}, may-alias: {0,1,2}]   ;;  %s3253_s3 = inlined_call_operand.vmem [shape: f32[9,2,128], index: 3, kind: input, shape index: {}]   ;;  %s3254_s4 = inlined_call_operand.vmem [shape: f32[2,2], index: 4, kind: input, shape index: {}]   ;;  %s3255_s5 = inlined_call_operand.vmem [shape: f32[2,16,16,128], index: 5, kind: output, shape index: {0}]   ;;  %s3256_s6 = inlined_call_operand.vmem [shape: f32[2,4,2,128], index: 6, kind: output, shape index: {1}]  }
   0x1   :  { %s2622_s23 = smov 0   ;;  %s2624_s24 = smov 0  }
   0x2   :  { %s2626_s25 = smov 0  }
   0x3 LB: > { %s32_s26 = sadd.s32 1, %s2573_s23  ;;  %s36_s27 = sadd.s32 1, %s2577_s24  ;;  %s2581_s25 = sphi %s2626_s25, %s17_s25   ;;  %s2577_s24 = sphi %s2624_s24, %s3277_s24   ;;  %s2573_s23 = sphi %s2622_s23, %s3276_s23   ;;  %s2569_s22 = sphi %s2620_s22, %s3275_s22   ;;  %s2565_s21 = sphi %s2618_s21, %s3274_s21  }
   0x4   : > { %p34_p0 = scmp.ge.s32.totalorder %s32_s26, 4  ;;  %p2171_p1 = scmp.ge.s32.totalorder %s2581_s25, 1 }
   0x5   : > { %p321_p2 = scmp.lt.s32.totalorder %s2581_s25, 9 }
   0x6   : > { %s3279_s26 = smov (%p34_p0, %s32_s26), 0  ;;  %s3281_s27 = smov (!%p34_p0, %s36_s27), %s2577_s24 }
   0x7   : > { %p322_p3 = pnand %p2171_p1, %p321_p2  ;;  %p38_p4 = scmp.ge.s32.totalorder %s3281_s27, 2 }
   0x8   : > { %s2654_s30 = sshll.u32 (!%p322_p3), %s2565_s21, 2  ;;  %p413_p5 = scmp.lt.s32.totalorder (!%p322_p3), %s2569_s22, 1 }
   0x9   : > { %s3283_s27 = smov (%p38_p4, %s3281_s27), 0  ;;  %325 = sbr.rel (%p322_p3) target bundleno = 328 (0x148), region = 40 }
   0xa   : > { %p415_p6 = scmp.lt.s32.totalorder (!%p322_p3), %s2654_s30, 17  ;;  %s2698_s15 = sadd.s32 (!%p322_p3), 4, %s2654_s30 }
   0xb   : > { %s443_s19 = sadd.s32 (!%p322_p3), 1, %s2698_s15  ;;  %p432_p8 = scmp.lt.s32.totalorder (!%p322_p3), %s2698_s15, 17 }
   0xc   : > { %p2738_p7 = scmp.lt.s32.totalorder (!%p322_p3), %s443_s19, 17  ;;  %p463_p9 = scmp.lt.s32.totalorder (!%p322_p3), %s2654_s30, 15 }
   0xd   : > { %p476_p10 = scmp.lt.s32.totalorder (!%p322_p3), %s2565_s21, 3 }
   0xe   : > { %v2187_v0 = vld [vmem:[%s3253_s3 + $0x2] sm:$0x3]  ;;  %vm745_vm0 = vcmask 1041408   ;;  %v574_v1 = vlaneseq  ;;  %v2660_v2 = vstv %s2654_s30  ;;  %s3285_s22 = smov (!%p413_p5, %s2569_s22), 1  ;;  %v2673_v5 = vld [vmem:[%s3253_s3] sm:$0x3] }
   0xf   : > { %2497 = vmatprep.subr.msk.mxu1 %vm745_vm0, %v2187_v0  ;;  %2371 = vmatprep.subr.msk.mxu0 %vm745_vm0, %v2187_v0  ;;  %v570_v4 = vadd.s32 2, %v2660_v2  ;;  %s416_s7 = scalar_select %p415_p6, %s2654_s30, 17  ;;  %v2678_v6 = vld [vmem:[%s3253_s3 + $0x4] sm:$0x3]  ;;  %vm578_vm1 = vcmp.ge.s32.totalorder %v2660_v2, 1  ;;  %vm584_vm2 = vcmp.le.s32.totalorder %v2660_v2, 16 }
  0x10   : > { %2498 = vmatpush3.msk.msra.mxu1 %vm745_vm0, %v2187_v0  ;;  %2372 = vmatpush3.msk.msra.mxu0 %vm745_vm0, %v2187_v0  ;;  %v2666_v3 = vshrl.u32 %v574_v1, 7  ;;  %s2681_s12 = smul.u32 54, %s3285_s22  ;;  %v569_v7 = vadd.s32 1, %v2660_v2  ;;  %v2694_v9 = vadd.s32 3, %v2660_v2  ;;  %v2703_v10 = vld [vmem:[%s3254_s4] ss:$0 sm:$0xff]  ;;  %vm2705_vm5 = vmand %vm578_vm1, %vm584_vm2 }
  0x11   : > { %2385 = vmatprep.subr.msk.mxu1 %vm745_vm0, %v2673_v5  ;;  %2399 = vmatprep.subr.msk.mxu0 %vm745_vm0, %v2678_v6  ;;  %s2499_s13 = smul.u32 3, %s416_s7  ;;  %vm580_vm3 = vcmp.ge.s32.totalorder %v570_v4, 1  ;;  %vm586_vm4 = vcmp.le.s32.totalorder %v570_v4, 16  ;;  %v2718_v12 = vld [vmem:[%s3254_s4 + $0x1] ss:$0 sm:$0xff]  ;;  %vm705_vm7 = vcmask 1046528  }
  0x12   : > { %v2691_v8 = vadd.s32 16, %v2666_v3  ;;  %vm596_vm6 = vcmp.ge.s32.totalorder %v2666_v3, 1  ;;  %vm2721_vm8 = vmand %vm580_vm3, %vm586_vm4  ;;  %vm579_vm9 = vcmp.ge.s32.totalorder %v569_v7, 1  ;;  %vm728_vm10 = vcmask 15360   ;;  %s3287_s19 = smov (!%p2738_p7, %s443_s19), 17  ;;  %s3289_s15 = smov (!%p432_p8, %s2698_s15), 17 }
  0x13   : > { %s419_s14 = sadd.s32 %s2681_s12, %s2499_s13  ;;  %vm585_vm12 = vcmp.le.s32.totalorder %v569_v7, 16  ;;  %vm581_vm13 = vcmp.ge.s32.totalorder %v2694_v9, 1  ;;  %vm2746_vm14 = vmand %vm2705_vm5, %vm596_vm6  ;;  %vm587_vm15 = vcmp.le.s32.totalorder %v2694_v9, 16  ;;  %s2502_s10 = smul.u32 3, %s3287_s19  ;;  %v2872_v9 = vld [vmem:[%s3253_s3 + $0x6] sm:$0x3] }
  0x14   : > { %s2173_s16 = sshll.u32 %s419_s14, 3  ;;  %vm619_vm11 = vcmp.le.s32.totalorder %v2691_v8, 16  ;;  %vm2763_vm1 = vmand %vm2721_vm8, %vm596_vm6  ;;  %v2883_v23 = vld [vmem:[%s3253_s3 + $0x8] sm:$0x3]  ;;  %s2501_s18 = smul.u32 3, %s3289_s15 }
  0x15   : > { %s2713_s29 = scalar_lea.vmem %s3250_s0, %s2173_s16  ;;  %vm2774_vm2 = vmand %vm2705_vm5, %vm619_vm11  ;;  %s2886_s17 = sadd.s32 %s2502_s10, %s2681_s12  ;;  %v2266_v8 = vld [vmem:[%s3253_s3 + $0x10] sm:$0x3] }
  0x16   : > { %v485_v14 = vld [vmem:[%s2713_s29] sm:$0xff]  ;;  %v486_v15 = vld [vmem:[%s2713_s29 + $0x8] sm:$0xff]  ;;  %v491_v16 = vld [vmem:[%s2713_s29 + $0x30] sm:$0xff]  ;;  %s2177_s15 = sshll.u32 %s2886_s17, 3  ;;  %s436_s19 = sadd.s32 %s2501_s18, %s2681_s12 }
  0x17   : > { %v509_v17 = vmul.f32 %v2703_v10, %v485_v14  ;;  %v510_v18 = vmul.f32 %v2703_v10, %v486_v15  ;;  %v492_v19 = vld [vmem:[%s2713_s29 + $0x38] sm:$0xff]  ;;  %v515_v20 = vmul.f32 %v2703_v10, %v491_v16  ;;  %v487_v21 = vld [vmem:[%s2713_s29 + $0x10] sm:$0x3]  ;;  %v493_v22 = vld [vmem:[%s2713_s29 + $0x40] sm:$0x3]  ;;  %s2175_s12 = sshll.u32 %s436_s19, 3 }
  0x18   : > { %v516_v24 = vmul.f32 %v2703_v10, %v492_v19  ;;  %v511_v25 = vmul.f32 %v2703_v10, %v487_v21  ;;  %v517_v26 = vmul.f32 %v2703_v10, %v493_v22  ;;  %v488_v27 = vld [vmem:[%s2713_s29 + $0x18] sm:$0xff]  ;;  %v489_v28 = vld [vmem:[%s2713_s29 + $0x20] sm:$0xff]  ;;  %vm2783_vm3 = vmand %vm579_vm9, %vm585_vm12  ;;  %s438_s9 = scalar_lea.vmem %s3251_s1, %s2175_s12  ;;  %s3291_s30 = smov (!%p463_p9, %s2654_s30), 15 }
  0x19   : > { %v531_v29 = vadd.f32 %v2718_v12, %v509_v17  ;;  %v532_v30 = vadd.f32 %v2718_v12, %v510_v18  ;;  %v537_v31 = vadd.f32 %v2718_v12, %v515_v20  ;;  %v512_v33 = vmul.f32 %v2703_v10, %v488_v27  ;;  %vm628_vm4 = vmand %vm2721_vm8, %vm619_vm11  ;;  %v494_v56 = vld [vmem:[%s2713_s29 + $0x48] sm:$0xff]  ;;  %v495_v0 = vld [vmem:[%s2713_s29 + $0x50] sm:$0xff]  ;;  %s2179_s19 = sshll.u32 %s3291_s30, 1  ;;  %s2180_s20 = sshll.u32 %s3285_s22, 5 }
  0x1a   : > { %v538_v34 = vadd.f32 %v2718_v12, %v516_v24  ;;  %v533_v35 = vadd.f32 %v2718_v12, %v511_v25  ;;  %v539_v37 = vadd.f32 %v2718_v12, %v517_v26  ;;  %v513_v38 = vmul.f32 %v2703_v10, %v489_v28  ;;  %v490_v1 = vld [vmem:[%s2713_s29 + $0x28] sm:$0x3]  ;;  %v496_v15 = vld [vmem:[%s2713_s29 + $0x58] sm:$0x3]  ;;  %vm625_vm12 = vmand %vm2783_vm3, %vm619_vm11  ;;  %s2932_s29 = scalar_lea.vmem %s3252_s2, %s2177_s15  ;;  %s470_s28 = sadd.s32 %s2180_s20, %s2179_s19 }
  0x1b   : > { %v549_v39 = vmax.f32 %v531_v29, 0.0  ;;  %v550_v40 = vmax.f32 %v532_v30, 0.0  ;;  %v555_v41 = vmax.f32 %v537_v31, 0.0  ;;  %v534_v42 = vadd.f32 %v2718_v12, %v512_v33  ;;  %s2181_s30 = sshll.u32 %s470_s28, 3  ;;  %s3293_s21 = smov (!%p476_p10, %s2565_s21), 3 }
  0x1c   : > { %v556_v44 = vmax.f32 %v538_v34, 0.0  ;;  %v551_v45 = vmax.f32 %v533_v35, 0.0  ;;  %v557_v46 = vmax.f32 %v539_v37, 0.0  ;;  %v535_v47 = vadd.f32 %v2718_v12, %v513_v38  ;;  %s3215_s7 = scalar_lea.vmem %s3255_s5, %s2181_s30  ;;  %s2182_s8 = sshll.u32 %s3285_s22, 2 }
  0x1d   : > { %v2801_v48 = vsel %vm2746_vm14, %v549_v39, 0.0  ;;  %v2805_v49 = vsel %vm2705_vm5, %v550_v40, 0.0  ;;  %v2809_v50 = vsel %vm2763_vm1, %v555_v41, 0.0  ;;  %v552_v51 = vmax.f32 %v534_v42, 0.0  ;;  %vm602_vm5 = vmand %vm2783_vm3, %vm596_vm6 }
  0x1e   : > { %v706_v52 = vrot.slane %v2801_v48, 1  ;;  %v707_v53 = vrot.slane %v2805_v49, 1  ;;  %v2815_v54 = vsel %vm2721_vm8, %v556_v44, 0.0  ;;  %v716_v55 = vrot.slane %v2809_v50, 1  ;;  %vm2856_vm8 = vmand %vm581_vm13, %vm587_vm15 }
  0x1f   : > { %v717_v57 = vrot.slane %v2815_v54, 1  ;;  %v2826_v58 = vsel %vm2774_vm2, %v551_v45, 0.0  ;;  %v2828_v59 = vsel %vm628_vm4, %v557_v46, 0.0  ;;  %v553_v60 = vmax.f32 %v535_v47, 0.0  ;;  %vm608_vm9 = vmand %vm2856_vm8, %vm596_vm6  ;;  %v502_v45 = vld [vmem:[%s2932_s29 + $0x10] sm:$0x3] }
  0x20   : > { %v708_v61 = vsel %vm705_vm7, %v706_v52, %v707_v53  ;;  %v709_v62 = vrot.slane %v2826_v58, 1  ;;  %v719_v63 = vrot.slane %v2828_v59, 1  ;;  %v2845_v7 = vsel %vm602_vm5, %v552_v51, 0.0  ;;  %vm631_vm13 = vmand %vm2856_vm8, %vm619_vm11  ;;  %v501_v47 = vld [vmem:[%s2932_s29 + $0x8] sm:$0xff] }
  0x21   : > { %2373 = vmatprep.mubr.msk.f32.mxu0 %vm728_vm10, %v708_v61  ;;  %v2843_v4 = vsel %vm705_vm7, %v716_v55, %v717_v57  ;;  %v2849_v11 = vsel %vm2783_vm3, %v553_v60, 0.0  ;;  %v518_v13 = vmul.f32 %v2703_v10, %v494_v56  ;;  %v711_v18 = vrot.slane %v2845_v7, 1 }
  0x22   : > { %2379 = vmatprep.mubr.msk.f32.mxu1 %vm728_vm10, %v2843_v4  ;;  %v710_v16 = vsel %vm705_vm7, %v707_v53, %v709_v62  ;;  %v2865_v17 = vsel %vm705_vm7, %v717_v57, %v719_v63  ;;  %v712_v19 = vrot.slane %v2849_v11, 1  ;;  %v519_v20 = vmul.f32 %v2703_v10, %v495_v0  ;;  %v2978_v63 = vld [vmem:[%s3253_s3 + $0xa] sm:$0x3] }
  0x23   : > { %2374 = vmatmul.mubr.msk.f32.vlgmr.msra.gmra.mxu0 %vm728_vm10, %v710_v16  ;;  %2380 = vmatmul.mubr.msk.f32.vlgmr.msra.gmra.mxu1 %vm728_vm10, %v2865_v17  ;;  %v540_v21 = vadd.f32 %v2718_v12, %v518_v13  ;;  %v514_v22 = vmul.f32 %v2703_v10, %v490_v1  ;;  %v520_v25 = vmul.f32 %v2703_v10, %v496_v15  ;;  %v979_v28 = vrot.slane %v2801_v48, 2  ;;  %v498_v0 = vld [vmem:[%s438_s9 + $0x8] sm:$0xff] }
  0x24   : > { %2386 = vmatpush3.msk.msra.mxu1 %vm745_vm0, %v2673_v5  ;;  %2400 = vmatpush3.msk.msra.mxu0 %vm745_vm0, %v2678_v6  ;;  %v2893_v24 = vsel %vm705_vm7, %v711_v18, %v712_v19  ;;  %v541_v26 = vadd.f32 %v2718_v12, %v519_v20  ;;  %v980_v32 = vrot.slane %v2805_v49, 2  ;;  %vm978_vm14 = vcmask 1045504   ;;  %v2246_v16 = vld [vmem:[%s3253_s3 + $0xc] sm:$0x3] }
  0x25   : > { %2376 = vmatprep.mubr.msk.f32.mxu0 %vm728_vm10, %v2893_v24  ;;  %v558_v5 = vmax.f32 %v540_v21, 0.0  ;;  %v536_v6 = vadd.f32 %v2718_v12, %v514_v22  ;;  %2413 = vmatprep.subr.msk.mxu1 %vm745_vm0, %v2872_v9  ;;  %v542_v27 = vadd.f32 %v2718_v12, %v520_v25  ;;  %v982_v37 = vrot.slane %v2826_v58, 2 }
  0x26   : > { %2427 = vmatprep.subr.msk.mxu0 %vm745_vm0, %v2883_v23  ;;  %v559_v29 = vmax.f32 %v541_v26, 0.0  ;;  %v981_v42 = vsel %vm978_vm14, %v979_v28, %v980_v32  ;;  %v573_v46 = vadd.s32 5, %v2660_v2  ;;  %v984_v52 = vrot.slane %v2845_v7, 2 }
  0x27   : > { %v2916_v30 = vsel %vm608_vm9, %v558_v5, 0.0  ;;  %v554_v31 = vmax.f32 %v536_v6, 0.0  ;;  %v560_v34 = vmax.f32 %v542_v27, 0.0  ;;  %v985_v53 = vrot.slane %v2849_v11, 2 }
  0x28   : > { %v721_v33 = vrot.slane %v2916_v30, 1  ;;  %v2927_v35 = vsel %vm2856_vm8, %v559_v29, 0.0  ;;  %v983_v55 = vsel %vm978_vm14, %v980_v32, %v982_v37  ;;  %v989_v57 = vrot.slane %v2809_v50, 2 }
  0x29   : > { %v679_v36 = vsel %vm625_vm12, %v554_v31, 0.0  ;;  %v722_v38 = vrot.slane %v2927_v35, 1  ;;  %v2936_v40 = vsel %vm631_vm13, %v560_v34, 0.0  ;;  %v990_v58 = vrot.slane %v2815_v54, 2 }
  0x2a   : > { %v714_v39 = vrot.slane %v679_v36, 1  ;;  %v724_v41 = vrot.slane %v2936_v40, 1  ;;  %v987_v56 = vrot.slane %v679_v36, 2  ;;  %v525_v60 = vmul.f32 %v2703_v10, %v501_v47  ;;  %v500_v47 = vld [vmem:[%s2932_s29] sm:$0xff] }
  0x2b   : > { %v2941_v43 = vsel %vm705_vm7, %v721_v33, %v722_v38  ;;  %v526_v61 = vmul.f32 %v2703_v10, %v502_v45  ;;  %vm583_vm15 = vcmp.ge.s32.totalorder %v573_v46, 1  ;;  %vm589_vm1 = vcmp.le.s32.totalorder %v573_v46, 16  ;;  %v2256_v45 = vld [vmem:[%s3253_s3 + $0xe] sm:$0x3] }
  0x2c   : > { %v2944_v44 = vsel %vm705_vm7, %v712_v19, %v714_v39  ;;  %2382 = vmatprep.mubr.msk.f32.mxu1 %vm728_vm10, %v2941_v43  ;;  %v2954_v51 = vsel %vm705_vm7, %v722_v38, %v724_v41  ;;  %v2973_v62 = vsel %vm978_vm14, %v984_v52, %v985_v53  ;;  %v547_v1 = vadd.f32 %v2718_v12, %v525_v60  ;;  %vm3005_vm2 = vmand %vm583_vm15, %vm589_vm1 }
  0x2d   : > { %2377 = vmatmul.mubr.msk.f32.gmra.mxu0 %vm728_vm10, %v2944_v44  ;;  %2383 = vmatmul.mubr.msk.f32.gmra.mxu1 %vm728_vm10, %v2954_v51  ;;  %v548_v13 = vadd.f32 %v2718_v12, %v526_v61  ;;  %v2987_v14 = vsel %vm978_vm14, %v985_v53, %v987_v56  ;;  %v992_v15 = vrot.slane %v2828_v59, 2  ;;  %v572_v18 = vadd.s32 4, %v2660_v2  ;;  %v499_v2 = vld [vmem:[%s438_s9 + $0x10] sm:$0x3]  ;;  %vm637_vm3 = vmand %vm3005_vm2, %vm619_vm11 }
  0x2e   : > { %2401 = vmatprep.mubr.msk.f32.mxu0 %vm728_vm10, %v981_v42  ;;  %2387 = vmatprep.mubr.msk.f32.mxu1 %vm728_vm10, %v2801_v48  ;;  %v497_v48 = vld [vmem:[%s438_s9] sm:$0xff]  ;;  %v994_v19 = vrot.slane %v2916_v30, 2  ;;  %v995_v20 = vrot.slane %v2927_v35, 2  ;;  %v522_v21 = vmul.f32 %v2703_v10, %v498_v0  ;;  %v565_v22 = vmax.f32 %v547_v1, 0.0  ;;  %s482_s9 = sadd.s32 %s2182_s8, %s3293_s21 }
  0x2f   : > { %v3027_v25 = vsel %vm978_vm14, %v990_v58, %v992_v15  ;;  %v997_v26 = vrot.slane %v2936_v40, 2  ;;  %vm582_vm4 = vcmp.ge.s32.totalorder %v572_v18, 1  ;;  %vm588_vm5 = vcmp.le.s32.totalorder %v572_v18, 16  ;;  %s2183_s10 = sshll.u32 %s482_s9, 1 }
  0x30   : > { %v3033_v5 = vsel %vm978_vm14, %v994_v19, %v995_v20  ;;  %v523_v6 = vmul.f32 %v2703_v10, %v499_v2  ;;  %v3038_v27 = vsel %vm3005_vm2, %v565_v22, 0.0  ;;  %v544_v31 = vadd.f32 %v2718_v12, %v522_v21  ;;  %vm594_vm8 = vmand %vm582_vm4, %vm588_vm5  ;;  %s484_s14 = scalar_lea.vmem %s3256_s6, %s2183_s10 }
  0x31   : > { %2402 = vmatmul.mubr.msk.f32.vlgmr.msra.gmra.mxu0 %vm728_vm10, %v983_v55  ;;  %2388 = vmatmul.mubr.msk.f32.vlgmr.msra.gmra.mxu1 %vm728_vm10, %v2805_v49  ;;  %v2999_v49 = vsel %vm978_vm14, %v989_v57, %v990_v58  ;;  %v1638_v32 = vrot.slane %v3038_v27, 1  ;;  %v3053_v34 = vsel %vm978_vm14, %v995_v20, %v997_v26  ;;  %vm611_vm9 = vmand %vm594_vm8, %vm596_vm6  ;;  %v524_v53 = vmul.f32 %v2703_v10, %v500_v47 }
  0x32   : > { %2428 = vmatpush3.msk.msra.mxu0 %vm745_vm0, %v2883_v23  ;;  %2414 = vmatpush3.msk.msra.mxu1 %vm745_vm0, %v2872_v9  ;;  %v521_v9 = vmul.f32 %v2703_v10, %v497_v48  ;;  %v566_v23 = vmax.f32 %v548_v13, 0.0  ;;  %v545_v37 = vadd.f32 %v2718_v12, %v523_v6  ;;  %v562_v39 = vmax.f32 %v544_v31, 0.0  ;;  %vm634_vm12 = vmand %vm594_vm8, %vm619_vm11 }
  0x33   : > { %2390 = vmatprep.mubr.msk.f32.mxu1 %vm728_vm10, %v2845_v7  ;;  %2404 = vmatprep.mubr.msk.f32.mxu0 %vm728_vm10, %v2973_v62  ;;  %v546_v55 = vadd.f32 %v2718_v12, %v524_v53  ;;  %vm614_vm11 = vmand %vm3005_vm2, %vm596_vm6  ;;  %v1765_v57 = vrot.slane %v3038_v27, 2 }
  0x34   : > { %2441 = vmatprep.subr.msk.mxu1 %vm745_vm0, %v2978_v63  ;;  %2455 = vmatprep.subr.msk.mxu0 %vm745_vm0, %v2246_v16  ;;  %v3040_v28 = vsel %vm637_vm3, %v566_v23, 0.0  ;;  %v543_v29 = vadd.f32 %v2718_v12, %v521_v9  ;;  %v563_v40 = vmax.f32 %v545_v37, 0.0  ;;  %v687_v42 = vsel %vm594_vm8, %v562_v39, 0.0 }
  0x35   : > { %2405 = vmatmul.mubr.msk.f32.gmra.mxu0 %vm728_vm10, %v2987_v14  ;;  %2391 = vmatmul.mubr.msk.f32.gmra.mxu1 %vm728_vm10, %v2849_v11  ;;  %v1640_v33 = vrot.slane %v3040_v28, 1  ;;  %v564_v10 = vmax.f32 %v546_v55, 0.0  ;;  %v1386_v56 = vrot.slane %v687_v42, 2 }
  0x36   : > { %2407 = vmatprep.mubr.msk.f32.mxu0 %vm728_vm10, %v2999_v49  ;;  %2393 = vmatprep.mubr.msk.f32.mxu1 %vm728_vm10, %v2809_v50  ;;  %v561_v38 = vmax.f32 %v543_v29, 0.0 }
  0x37   : > { %v3059_v36 = vsel %vm705_vm7, %v1638_v32, %v1640_v33  ;;  %v689_v12 = vsel %vm614_vm11, %v564_v10, 0.0 }
  0x38   : > { %v686_v41 = vsel %vm611_vm9, %v561_v38, 0.0  ;;  %v1637_v58 = vrot.slane %v689_v12, 1 }
  0x39   : > { %2408 = vmatmul.mubr.msk.f32.gmra.mxu0 %vm728_vm10, %v3027_v25  ;;  %2394 = vmatmul.mubr.msk.f32.gmra.mxu1 %vm728_vm10, %v2815_v54 }
  0x3a   : > { %2410 = vmatprep.mubr.msk.f32.mxu0 %vm728_vm10, %v3033_v5  ;;  %2396 = vmatprep.mubr.msk.f32.mxu1 %vm728_vm10, %v2916_v30  ;;  %v1639_v60 = vsel %vm705_vm7, %v1637_v58, %v1638_v32 }
  0x3d   : > { %2411 = vmatmul.mubr.msk.f32.gmra.mxu0 %vm728_vm10, %v3053_v34  ;;  %2397 = vmatmul.mubr.msk.f32.gmra.mxu1 %vm728_vm10, %v2927_v35 }
  0x3e   : > { %2429 = vmatprep.mubr.msk.f32.mxu0 %vm728_vm10, %v2893_v24  ;;  %2415 = vmatprep.mubr.msk.f32.mxu1 %vm728_vm10, %v2845_v7  ;;  %v1258_v7 = vrot.slane %v686_v41, 1  ;;  %v1259_v24 = vrot.slane %v687_v42, 1 }
  0x40   : > { %v1260_v46 = vsel %vm705_vm7, %v1258_v7, %v1259_v24 }
  0x41   : > { %2430 = vmatmul.mubr.msk.f32.vlgmr.msra.gmra.mxu0 %vm728_vm10, %v2944_v44  ;;  %2416 = vmatmul.mubr.msk.f32.vlgmr.msra.gmra.mxu1 %vm728_vm10, %v2849_v11  ;;  %v688_v44 = vsel %vm634_vm12, %v563_v40, 0.0 }
  0x42   : > { %2456 = vmatpush3.msk.msra.mxu0 %vm745_vm0, %v2246_v16  ;;  %2442 = vmatpush3.msk.msra.mxu1 %vm745_vm0, %v2978_v63  ;;  %v1261_v11 = vrot.slane %v688_v44, 1 }
  0x43   : > { %2418 = vmatprep.mubr.msk.f32.mxu1 %vm728_vm10, %v2809_v50  ;;  %2432 = vmatprep.mubr.msk.f32.mxu0 %vm728_vm10, %v2843_v4 }
  0x44   : > { %2469 = vmatprep.subr.msk.mxu1 %vm745_vm0, %v2256_v45  ;;  %2483 = vmatprep.subr.msk.mxu0 %vm745_vm0, %v2266_v8  ;;  %v1262_v52 = vsel %vm705_vm7, %v1259_v24, %v1261_v11 }
  0x45   : > { %2433 = vmatmul.mubr.msk.f32.gmra.mxu0 %vm728_vm10, %v2865_v17  ;;  %2419 = vmatmul.mubr.msk.f32.gmra.mxu1 %vm728_vm10, %v2815_v54 }
  0x46   : > { %2435 = vmatprep.mubr.msk.f32.mxu0 %vm728_vm10, %v2941_v43  ;;  %2421 = vmatprep.mubr.msk.f32.mxu1 %vm728_vm10, %v2916_v30 }
  0x49   : > { %2436 = vmatmul.mubr.msk.f32.gmra.mxu0 %vm728_vm10, %v2954_v51  ;;  %2422 = vmatmul.mubr.msk.f32.gmra.mxu1 %vm728_vm10, %v2927_v35 }
  0x4a   : > { %2438 = vmatprep.mubr.msk.f32.mxu0 %vm728_vm10, %v1260_v46  ;;  %2424 = vmatprep.mubr.msk.f32.mxu1 %vm728_vm10, %v686_v41 }
  0x4d   : > { %2439 = vmatmul.mubr.msk.f32.gmra.mxu0 %vm728_vm10, %v1262_v52  ;;  %2425 = vmatmul.mubr.msk.f32.gmra.mxu1 %vm728_vm10, %v687_v42 }
  0x4e   : > { %2457 = vmatprep.mubr.msk.f32.mxu0 %vm728_vm10, %v2809_v50  ;;  %2443 = vmatprep.mubr.msk.f32.mxu1 %vm728_vm10, %v2973_v62  ;;  %v1385_v50 = vrot.slane %v686_v41, 2 }
  0x51   : > { %2458 = vmatmul.mubr.msk.f32.vlgmr.msra.gmra.mxu0 %vm728_vm10, %v2815_v54  ;;  %2444 = vmatmul.mubr.msk.f32.vlgmr.msra.gmra.mxu1 %vm728_vm10, %v2987_v14  ;;  %v1388_v54 = vrot.slane %v688_v44, 2 }
  0x52   : > { %2484 = vmatpush3.msk.msra.mxu0 %vm745_vm0, %v2266_v8  ;;  %2470 = vmatpush3.msk.msra.mxu1 %vm745_vm0, %v2256_v45  ;;  %vm1933_vm0 = vcmask 1040384  }
  0x53   : > { %2446 = vmatprep.mubr.msk.f32.mxu1 %vm728_vm10, %v2999_v49  ;;  %2460 = vmatprep.mubr.msk.f32.mxu0 %vm728_vm10, %v2916_v30  ;;  %v1387_v30 = vsel %vm978_vm14, %v1385_v50, %v1386_v56  ;;  %v1389_v3 = vsel %vm978_vm14, %v1386_v56, %v1388_v54 }
  0x55   : > { %2461 = vmatmul.mubr.msk.f32.gmra.mxu0 %vm728_vm10, %v2927_v35  ;;  %2447 = vmatmul.mubr.msk.f32.gmra.mxu1 %vm728_vm10, %v3027_v25  ;;  %v1764_v35 = vrot.slane %v689_v12, 2 }
  0x56   : > { %2463 = vmatprep.mubr.msk.f32.mxu0 %vm728_vm10, %v686_v41  ;;  %2449 = vmatprep.mubr.msk.f32.mxu1 %vm728_vm10, %v3033_v5 }
  0x59   : > { %2464 = vmatmul.mubr.msk.f32.gmra.mxu0 %vm728_vm10, %v687_v42  ;;  %2450 = vmatmul.mubr.msk.f32.gmra.mxu1 %vm728_vm10, %v3053_v34 }
  0x5a   : > { %2466 = vmatprep.mubr.msk.f32.mxu0 %vm728_vm10, %v689_v12  ;;  %2452 = vmatprep.mubr.msk.f32.mxu1 %vm728_vm10, %v1387_v30 }
  0x5d   : > { %2467 = vmatmul.mubr.msk.f32.gmra.mxu0 %vm728_vm10, %v3038_v27  ;;  %2453 = vmatmul.mubr.msk.f32.gmra.mxu1 %vm728_vm10, %v1389_v3 }
  0x5e   : > { %2485 = vmatprep.mubr.msk.f32.mxu0 %vm728_vm10, %v2999_v49  ;;  %2471 = vmatprep.mubr.msk.f32.mxu1 %vm728_vm10, %v2843_v4  ;;  %v1767_v4 = vrot.slane %v3040_v28, 2 }
  0x61   : > { %2486 = vmatmul.mubr.msk.f32.vlgmr.msra.gmra.mxu0 %vm728_vm10, %v3027_v25  ;;  %2472 = vmatmul.mubr.msk.f32.vlgmr.msra.gmra.mxu1 %vm728_vm10, %v2865_v17  ;;  %v1766_v17 = vsel %vm978_vm14, %v1764_v35, %v1765_v57 }
  0x62   : > { %2488 = vmatprep.mubr.msk.f32.mxu0 %vm728_vm10, %v3033_v5  ;;  %2474 = vmatprep.mubr.msk.f32.mxu1 %vm728_vm10, %v2941_v43  ;;  %v1768_v43 = vsel %vm978_vm14, %v1765_v57, %v1767_v4 }
  0x65   : > { %2489 = vmatmul.mubr.msk.f32.gmra.mxu0 %vm728_vm10, %v3053_v34  ;;  %2475 = vmatmul.mubr.msk.f32.gmra.mxu1 %vm728_vm10, %v2954_v51 }
  0x66   : > { %2491 = vmatprep.mubr.msk.f32.mxu0 %vm728_vm10, %v1387_v30  ;;  %2477 = vmatprep.mubr.msk.f32.mxu1 %vm728_vm10, %v1260_v46 }
  0x69   : > { %2492 = vmatmul.mubr.msk.f32.gmra.mxu0 %vm728_vm10, %v1389_v3  ;;  %2478 = vmatmul.mubr.msk.f32.gmra.mxu1 %vm728_vm10, %v1262_v52 }
  0x6a   : > { %2494 = vmatprep.mubr.msk.f32.mxu0 %vm728_vm10, %v1766_v17  ;;  %2480 = vmatprep.mubr.msk.f32.mxu1 %vm728_vm10, %v1639_v60 }
  0x6d   : > { %2495 = vmatmul.mubr.msk.f32.gmra.mxu0 %vm728_vm10, %v1768_v43  ;;  %2481 = vmatmul.mubr.msk.f32.gmra.mxu1 %vm728_vm10, %v3059_v36 }
  0xe3   : > { %v2375_v51 = vpop.f32.mrf.mxu0  ;;  %v2381_v61 = vpop.f32.mrf.mxu1 }
  0xe5   : > { %v815_v62 = vpop.f32.mrf.mxu0  ;;  %v835_v63 = vpop.f32.mrf.mxu1 }
  0xed   : > { %v2378_v48 = vpop.f32.mrf.mxu0  ;;  %v3183_v0 = vpop.f32.mrf.mxu1 }
  0xef   : > { %v825_v1 = vpop.f32.mrf.mxu0  ;;  %v3185_v13 = vpop.f32.mrf.mxu1 }
  0xf1   : > { %v2403_v14 = vpop.f32.mrf.mxu0  ;;  %v2389_v15 = vpop.f32.mrf.mxu1 }
  0xf2   : > { %v945_v8 = vadd.f32 %v2389_v15, %v2375_v51 }
  0xf3   : > { %v1086_v16 = vpop.f32.mrf.mxu0  ;;  %v939_v18 = vpop.f32.mrf.mxu1 }
  0xf4   : > { %v940_v44 = vadd.f32 %v939_v18, %v815_v62  ;;  %v1126_v47 = vadd.f32 %v2403_v14, %v945_v8 }
  0xf5   : > { %v2406_v49 = vpop.f32.mrf.mxu0  ;;  %v2392_v19 = vpop.f32.mrf.mxu1 }
  0xf6   : > { %v955_v52 = vadd.f32 %v2392_v19, %v2378_v48  ;;  %v1125_v10 = vadd.f32 %v1086_v16, %v940_v44 }
  0xf7   : > { %v1096_v20 = vpop.f32.mrf.mxu0  ;;  %v949_v59 = vpop.f32.mrf.mxu1 }
  0xf8   : > { %v950_v50 = vadd.f32 %v949_v59, %v825_v1  ;;  %v1128_v30 = vadd.f32 %v2406_v49, %v955_v52 }
  0xf9   : > { %v2409_v2 = vpop.f32.mrf.mxu0  ;;  %v2395_v9 = vpop.f32.mrf.mxu1 }
  0xfa   : > { %v965_v3 = vadd.f32 %v2395_v9, %v2381_v61  ;;  %v1127_v17 = vadd.f32 %v1096_v20, %v950_v50 }
  0xfb   : > { %v1106_v21 = vpop.f32.mrf.mxu0  ;;  %v959_v22 = vpop.f32.mrf.mxu1 }
  0xfc   : > { %v960_v58 = vadd.f32 %v959_v22, %v835_v63  ;;  %v1130_v48 = vadd.f32 %v2409_v2, %v965_v3 }
  0xfd   : > { %v3187_v23 = vpop.f32.mrf.mxu0  ;;  %v2398_v25 = vpop.f32.mrf.mxu1 }
  0xfe   : > { %v1129_v18 = vadd.f32 %v1106_v21, %v960_v58  ;;  %v975_v61 = vadd.f32 %v2398_v25, %v3183_v0 }
  0xff   : > { %v3189_v26 = vpop.f32.mrf.mxu0  ;;  %v969_v5 = vpop.f32.mrf.mxu1 }
 0x100   : > { %v970_v63 = vadd.f32 %v969_v5, %v3185_v13 }
 0x101   : > { %v2431_v6 = vpop.f32.mrf.mxu0  ;;  %v2417_v27 = vpop.f32.mrf.mxu1 }
 0x102   : > { %v1250_v56 = vadd.f32 %v2417_v27, %v1126_v47  ;;  %v1131_v21 = vadd.f32 %v3189_v26, %v970_v63 }
 0x103   : > { %v1338_v28 = vpop.f32.mrf.mxu0  ;;  %v1210_v29 = vpop.f32.mrf.mxu1 }
 0x104   : > { %v1249_v35 = vadd.f32 %v1210_v29, %v1125_v10  ;;  %v1378_v60 = vadd.f32 %v2431_v6, %v1250_v56 }
 0x105   : > { %v2434_v31 = vpop.f32.mrf.mxu0  ;;  %v2420_v32 = vpop.f32.mrf.mxu1 }
 0x106   : > { %v1252_v43 = vadd.f32 %v2420_v32, %v1128_v30  ;;  %v1377_v1 = vadd.f32 %v1338_v28, %v1249_v35  ;;  %v1132_v32 = vadd.f32 %v3187_v23, %v975_v61 }
 0x107   : > { %v1348_v33 = vpop.f32.mrf.mxu0  ;;  %v1220_v34 = vpop.f32.mrf.mxu1 }
 0x108   : > { %v1251_v14 = vadd.f32 %v1220_v34, %v1127_v17  ;;  %v1380_v19 = vadd.f32 %v2434_v31, %v1252_v43 }
 0x109   : > { %v2437_v36 = vpop.f32.mrf.mxu0  ;;  %v2423_v37 = vpop.f32.mrf.mxu1 }
 0x10a   : > { %v1254_v20 = vadd.f32 %v2423_v37, %v1130_v48  ;;  %v1379_v27 = vadd.f32 %v1348_v33, %v1251_v14 }
 0x10b   : > { %v3191_v38 = vpop.f32.mrf.mxu0  ;;  %v1230_v39 = vpop.f32.mrf.mxu1 }
 0x10c   : > { %v1253_v22 = vadd.f32 %v1230_v39, %v1129_v18  ;;  %v1382_v25 = vadd.f32 %v2437_v36, %v1254_v20 }
 0x10d   : > { %v3193_v40 = vpop.f32.mrf.mxu0  ;;  %v3195_v41 = vpop.f32.mrf.mxu1 }
 0x10e   : > { %v1381_v37 = vadd.f32 %v3191_v38, %v1253_v22  ;;  %v1256_v39 = vadd.f32 %v3195_v41, %v1132_v32 }
 0x10f   : > { %v3197_v42 = vpop.f32.mrf.mxu0  ;;  %v1240_v45 = vpop.f32.mrf.mxu1 }
 0x110   : > { %v1255_v8 = vadd.f32 %v1240_v45, %v1131_v21  ;;  %v1384_v47 = vadd.f32 %v3193_v40, %v1256_v39 }
 0x111   : > { %v2459_v7 = vpop.f32.mrf.mxu0  ;;  %v2445_v24 = vpop.f32.mrf.mxu1 }
 0x112   : > { %v1505_v15 = vadd.f32 %v2445_v24, %v1378_v60  ;;  %v1383_v52 = vadd.f32 %v3197_v42, %v1255_v8 }
 0x113   : > { %v1589_v11 = vpop.f32.mrf.mxu0  ;;  %v1465_v46 = vpop.f32.mrf.mxu1 }
 0x114   : > { %v1504_v59 = vadd.f32 %v1465_v46, %v1377_v1  ;;  %v1629_v2 = vadd.f32 %v2459_v7, %v1505_v15 }
 0x115   : > { %v2462_v53 = vpop.f32.mrf.mxu0  ;;  %v2448_v55 = vpop.f32.mrf.mxu1 }
 0x116   : > { %v1507_v28 = vadd.f32 %v2448_v55, %v1380_v19  ;;  %v1628_v13 = vadd.f32 %v1589_v11, %v1504_v59 }
 0x117   : > { %v1599_v12 = vpop.f32.mrf.mxu0  ;;  %v1475_v54 = vpop.f32.mrf.mxu1 }
 0x118   : > { %v1506_v5 = vadd.f32 %v1475_v54, %v1379_v27  ;;  %v1631_v33 = vadd.f32 %v2462_v53, %v1507_v28 }
 0x119   : > { %v2465_v57 = vpop.f32.mrf.mxu0  ;;  %v2451_v4 = vpop.f32.mrf.mxu1 }
 0x11a   : > { %v1509_v26 = vadd.f32 %v2451_v4, %v1382_v25  ;;  %v1630_v11 = vadd.f32 %v1599_v12, %v1506_v5 }
 0x11b   : > { %v3201_v51 = vpop.f32.mrf.mxu0  ;;  %v1485_v62 = vpop.f32.mrf.mxu1 }
 0x11c   : > { %v1508_v46 = vadd.f32 %v1485_v62, %v1381_v37  ;;  %v1633_v10 = vadd.f32 %v2465_v57, %v1509_v26 }
 0x11d   : > { %v3204_v16 = vpop.f32.mrf.mxu0  ;;  %v2454_v49 = vpop.f32.mrf.mxu1 }
 0x11e   : > { %v1511_v30 = vadd.f32 %v2454_v49, %v1384_v47  ;;  %v1632_v58 = vadd.f32 %v3201_v51, %v1508_v46 }
 0x11f   : > { %v1619_v9 = vpop.f32.mrf.mxu0  ;;  %v1495_v6 = vpop.f32.mrf.mxu1 }
 0x120   : > { %v1510_v12 = vadd.f32 %v1495_v6, %v1383_v52  ;;  %v1635_v14 = vadd.f32 %v3204_v16, %v1511_v30 }
 0x121   : > { %v2487_v29 = vpop.f32.mrf.mxu0  ;;  %v2473_v0 = vpop.f32.mrf.mxu1 }
 0x122   : > { %v1757_v34 = vadd.f32 %v2473_v0, %v1629_v2  ;;  %v1634_v15 = vadd.f32 %v1619_v9, %v1510_v12 }
 0x123   : > { %v1844_v31 = vpop.f32.mrf.mxu0  ;;  %v1717_v23 = vpop.f32.mrf.mxu1 }
 0x124   : > { %v1884_v36 = vadd.f32 %v2487_v29, %v1757_v34  ;;  %v1756_v7 = vadd.f32 %v1717_v23, %v1628_v13 }
 0x125   : > { %v2490_v24 = vpop.f32.mrf.mxu0  ;;  %v2476_v44 = vpop.f32.mrf.mxu1 }
 0x126   : > { %1892 = vst [vmem:[%s3215_s7 + $0x8] sm:$0xff] %v1884_v36  ;;  %v1883_v38 = vadd.f32 %v1844_v31, %v1756_v7  ;;  %v1759_v41 = vadd.f32 %v2476_v44, %v1631_v33  ;;  %v1913_v3 = vmul.f32 %v1884_v36, %v1884_v36 }
 0x127   : > { %v1854_v45 = vpop.f32.mrf.mxu0  ;;  %v1727_v55 = vpop.f32.mrf.mxu1 }
 0x128   : > { %1891 = vst [vmem:[%s3215_s7] sm:$0xff] %v1883_v38  ;;  %v1912_v53 = vmul.f32 %v1883_v38, %v1883_v38  ;;  %v1886_v50 = vadd.f32 %v2490_v24, %v1759_v41  ;;  %v1758_v56 = vadd.f32 %v1727_v55, %v1630_v11  ;;  %v1899_v4 = vadd.f32 %v1884_v36, %v1883_v38 }
 0x129   : > { %v2493_v54 = vpop.f32.mrf.mxu0  ;;  %v2479_v35 = vpop.f32.mrf.mxu1 }
 0x12a   : > { %1894 = vst [vmem:[%s3215_s7 + $0x18] sm:$0xff] %v1886_v50  ;;  %v1885_v17 = vadd.f32 %v1854_v45, %v1758_v56  ;;  %v1761_v40 = vadd.f32 %v2479_v35, %v1633_v10  ;;  %v1920_v60 = vadd.f32 %v1913_v3, %v1912_v53  ;;  %v1915_v51 = vmul.f32 %v1886_v50, %v1886_v50 }
 0x12b   : > { %v1864_v42 = vpop.f32.mrf.mxu0  ;;  %v1737_v57 = vpop.f32.mrf.mxu1 }
 0x12c   : > { %1893 = vst [vmem:[%s3215_s7 + $0x10] sm:$0xff] %v1885_v17  ;;  %v1900_v43 = vadd.f32 %v1899_v4, %v1885_v17  ;;  %v1914_v62 = vmul.f32 %v1885_v17, %v1885_v17  ;;  %v1888_v48 = vadd.f32 %v2493_v54, %v1761_v40  ;;  %v1760_v1 = vadd.f32 %v1737_v57, %v1632_v58 }
 0x12d   : > { %v2482_v18 = vpop.f32.mrf.mxu1  ;;  %v2496_v61 = vpop.f32.mrf.mxu0 }
 0x12e   : > { %v1921_v63 = vadd.f32 %v1920_v60, %v1914_v62  ;;  %1896 = vst [vmem:[%s3215_s7 + $0x28] sm:$0xff] %v1888_v48  ;;  %v1887_v49 = vadd.f32 %v1864_v42, %v1760_v1  ;;  %v1901_v19 = vadd.f32 %v1900_v43, %v1886_v50  ;;  %v1763_v20 = vadd.f32 %v2482_v18, %v1635_v14 }
 0x12f   : > { %v1747_v59 = vpop.f32.mrf.mxu1  ;;  %v1874_v16 = vpop.f32.mrf.mxu0  ;;  %v1917_v9 = vmul.f32 %v1888_v48, %v1888_v48 }
 0x130   : > { %1895 = vst [vmem:[%s3215_s7 + $0x20] sm:$0xff] %v1887_v49  ;;  %v1902_v22 = vadd.f32 %v1901_v19, %v1887_v49  ;;  %v1916_v6 = vmul.f32 %v1887_v49, %v1887_v49  ;;  %v1922_v27 = vadd.f32 %v1921_v63, %v1915_v51  ;;  %v1762_v2 = vadd.f32 %v1747_v59, %v1634_v15 }
 0x131   : > { %v1890_v28 = vadd.f32 %v2496_v61, %v1763_v20 }
 0x132   : > { %v1923_v29 = vadd.f32 %v1922_v27, %v1916_v6  ;;  %v1889_v32 = vadd.f32 %v1874_v16, %v1762_v2  ;;  %v1903_v21 = vadd.f32 %v1902_v22, %v1888_v48 }
 0x133   : > { %1898 = vst [vmem:[%s3215_s7 + $0x38] sm:$0xff] %v1890_v28  ;;  %v1919_v5 = vmul.f32 %v1890_v28, %v1890_v28 }
 0x134   : > { %1897 = vst [vmem:[%s3215_s7 + $0x30] sm:$0xff] %v1889_v32  ;;  %v1904_v0 = vadd.f32 %v1903_v21, %v1889_v32  ;;  %v1918_v25 = vmul.f32 %v1889_v32, %v1889_v32  ;;  %v1924_v13 = vadd.f32 %v1923_v29, %v1917_v9 }
 0x136   : > { %v1905_v34 = vadd.f32 %v1904_v0, %v1890_v28  ;;  %v1925_v31 = vadd.f32 %v1924_v13, %v1918_v25 }
 0x138   : > { %v1906_v37 = vrot.slane %v1905_v34, 4  ;;  %v1926_v39 = vadd.f32 %v1925_v31, %v1919_v5 }
 0x13a   : > { %v1907_v8 = vadd.f32 %v1906_v37, %v1905_v34  ;;  %v1927_v23 = vrot.slane %v1926_v39, 4 }
 0x13c   : > { %v1908_v33 = vrot.slane %v1907_v8, 2  ;;  %v1928_v26 = vadd.f32 %v1927_v23, %v1926_v39 }
 0x13e   : > { %v1909_v36 = vadd.f32 %v1908_v33, %v1907_v8  ;;  %v1929_v7 = vrot.slane %v1928_v26, 2 }
 0x140   : > { %v1910_v24 = vrot.slane %v1909_v36, 1  ;;  %v1930_v44 = vadd.f32 %v1929_v7, %v1928_v26 }
 0x142   : > { %v1931_v11 = vrot.slane %v1930_v44, 1  ;;  %v1911_v46 = vadd.f32 %v1910_v24, %v1909_v36 }
 0x144   : > { %v1932_v38 = vadd.f32 %v1931_v11, %v1930_v44 }
 0x146   : > { %v1934_v41 = vsel %vm1933_vm0, %v1911_v46, %v1932_v38 }
 0x147   : > { %1935 = vst [vmem:[%s484_s14] sm:$0x3] %v1934_v41 }
 0x148 PF: > { %s17_s25 = sadd.s32 1, %s2581_s25   ;;  %s3274_s21 = smov %s2573_s23 }
 0x149   : > { %p14_p11 = scmp.ge.s32.totalorder %s17_s25, 10   ;;  %s3275_s22 = smov %s2577_s24 }
 0x14a   : > { %s3276_s23 = smov %s3279_s26  ;;  %s3277_s24 = smov %s3283_s27 }
 0x14b   :  { %16 = sbr.rel (!%p14_p11) target bundleno = 3 (0x3), region = 99 }

</bundles_post_ra>
